<compile_context>
chip_gen: v7x
topology: tpu7x:2x2x1
jax: 0.10.0
libtpu: 0.0.40
codegen_flags: <defaults>
</compile_context>

<pallas_src>
import functools
import numpy as np

import jax
import jax.numpy as jnp
from jax.experimental import pallas as pl
from jax.experimental.pallas import tpu as pltpu


# ----------------------------- tile pickers -----------------------------

def _pick_patch_rows(R, P, max_rows, input_budget_bytes=12 * 1024 * 1024):
    """Largest row-tile that divides R, is a multiple of 8 (or == R), fits budget."""
    cap = min(max_rows, max(8, input_budget_bytes // (2 * 2 * 4 * max(P, 1))))
    valid = [d for d in range(1, R + 1) if R % d == 0 and (d % 8 == 0 or d == R)]
    fitting = [d for d in valid if d <= cap]
    return max(fitting) if fitting else min(valid)


def _pick_cls_chunk(C, B, D, max_rows, input_budget_bytes=8 * 1024 * 1024):
    """Number of student crops per chunk: rows = Ct*B must be a multiple of 8
    (or cover all crops) and fit a VMEM budget."""
    cap = min(max_rows, max(8, input_budget_bytes // (2 * 4 * max(D, 1))))
    valid = [ct for ct in range(1, C + 1)
             if C % ct == 0 and ((ct * B) % 8 == 0 or ct == C)]
    fitting = [ct for ct in valid if ct * B <= cap]
    return max(fitting) if fitting else min(valid)


# ----------------------------- Pallas kernels -----------------------------

def _cls_loss_kernel(t_ref, s_ref, c_ref, loss_ref, tsum_ref, te_s, tz_s, *,
                     B, Ct, inv_temp, inv_student_temp):
    """grid = (G, n_chunks).  For teacher crop q, accumulate over student-crop chunks j
    the sum over crops v != q of mean_b CE(q, v).  Also emits the per-q batch-sum of
    the raw teacher cls logits (fused EMA-center partial)."""
    q = pl.program_id(0)
    j = pl.program_id(1)

    @pl.when(j == 0)
    def _():
        t = t_ref[0].astype(jnp.float32)                          # [B, D]
        # fused center partial: sum over batch of the raw teacher logits
        tsum_ref[...] = jnp.sum(t, axis=0, keepdims=True)[None]   # (1, 1, D)
        c = c_ref[...].astype(jnp.float32)                        # (1, D)
        tl = (t - c) * inv_temp
        tl = tl - jnp.max(tl, axis=-1, keepdims=True)
        te = jnp.exp(tl)                                          # softmax numerator
        te_s[...] = te
        tz_s[...] = jnp.sum(te, axis=-1, keepdims=True)           # softmax denominator
        loss_ref[...] = jnp.zeros_like(loss_ref)

    # student chunk: Ct crops x B rows, log-softmax at full sublane utilisation
    s = s_ref[...].astype(jnp.float32)                            # [Ct*B, D]
    sl = s * inv_student_temp
    sl = sl - jnp.max(sl, axis=-1, keepdims=True)
    s_ls = sl - jnp.log(jnp.sum(jnp.exp(sl), axis=-1, keepdims=True))

    te = te_s[...]                                                # [B, D]  (cached)
    tz = tz_s[...]                                                # [B, 1]

    acc = jnp.zeros((), jnp.float32)
    for vv in range(Ct):                                          # unrolled at trace time
        s_v = s_ls[vv * B:(vv + 1) * B, :]                        # [B, D] static slice
        dot = jnp.sum(te * s_v, axis=-1, keepdims=True)           # [B, 1]
        ce_mean = jnp.sum(-dot / tz) / B                          # divide after reduction
        crop = j * Ct + vv
        acc = acc + jnp.where(crop != q, ce_mean, 0.0)            # skip the diagonal

    loss_ref[...] = loss_ref[...] + acc


def _patch_loss_kernel(t_ref, s_ref, c_ref, w_ref, loss_ref, psum_ref, *,
                       inv_temp2, inv_student_temp):
    """grid = (row tiles,).  Masked patch CE for the diagonal (q == v) pairs; the
    per-sample mask normalisation is already folded into the per-row weight.  Also
    emits the per-tile row-sum of the raw teacher patches (fused EMA-center2 partial)."""
    t = t_ref[...].astype(jnp.float32)                            # [Rt, P]
    s = s_ref[...].astype(jnp.float32)                            # [Rt, P]
    c = c_ref[...].astype(jnp.float32)                            # (1, P)
    w = w_ref[...].astype(jnp.float32)                            # [Rt, 1]

    # fused center2 partial: sum of raw teacher rows in this tile
    psum_ref[...] = jnp.sum(t, axis=0, keepdims=True)[None]       # (1, 1, P)

    tl = (t - c) * inv_temp2
    tl = tl - jnp.max(tl, axis=-1, keepdims=True)
    te = jnp.exp(tl)
    tz = jnp.sum(te, axis=-1, keepdims=True)                      # [Rt, 1]

    sl = s * inv_student_temp
    sl = sl - jnp.max(sl, axis=-1, keepdims=True)
    s_ls = sl - jnp.log(jnp.sum(jnp.exp(sl), axis=-1, keepdims=True))

    dot = jnp.sum(te * s_ls, axis=-1, keepdims=True)              # [Rt, 1]
    ce = -dot / tz                                                # divide after reduction
    loss_ref[...] = jnp.zeros_like(loss_ref) + jnp.sum(ce * w)


# ----------------------------- jitted forward -----------------------------

def _ibot_forward(student_cls, student_local_cls, student_patch,
                  teacher_cls, teacher_patch, student_mask, center, center2, *,
                  temp, temp2, ngcrops, ncrops, student_temp,
                  lambda1, lambda2, center_momentum, center_momentum2,
                  max_patch_tile_rows, max_cls_chunk_rows):
    G, C = ngcrops, ncrops
    M, D = teacher_cls.shape
    B = M // G
    _, N, P = teacher_patch.shape

    if student_local_cls is not None:
        student_cls_all = jnp.concatenate([student_cls, student_local_cls], axis=0)
    else:
        student_cls_all = student_cls

    # ---------------- cls loss (+ fused teacher-cls sum) ----------------
    t3 = teacher_cls.reshape(G, B, D)
    s2 = student_cls_all.reshape(C * B, D)

    Ct = _pick_cls_chunk(C, B, D, max_cls_chunk_rows)
    nj = C // Ct
    VB = Ct * B

    cls_kernel = functools.partial(
        _cls_loss_kernel, B=B, Ct=Ct,
        inv_temp=float(1.0 / temp), inv_student_temp=float(1.0 / student_temp))

    loss1_part, tsum_part = pl.pallas_call(
        cls_kernel,
        out_shape=(jax.ShapeDtypeStruct((G, 1, 1), jnp.float32),
                   jax.ShapeDtypeStruct((G, 1, D), jnp.float32)),
        grid=(G, nj),
        in_specs=[
            pl.BlockSpec((1, B, D), lambda q, j: (q, 0, 0)),   # teacher crop q
            pl.BlockSpec((VB, D), lambda q, j: (j, 0)),        # student crop chunk j
            pl.BlockSpec((1, D), lambda q, j: (0, 0)),         # center
        ],
        out_specs=(pl.BlockSpec((1, 1, 1), lambda q, j: (q, 0, 0)),
                   pl.BlockSpec((1, 1, D), lambda q, j: (q, 0, 0))),
        scratch_shapes=[pltpu.VMEM((B, D), jnp.float32),        # cached teacher exp
                        pltpu.VMEM((B, 1), jnp.float32)],       # cached teacher Z
        compiler_params=pltpu.CompilerParams(
            dimension_semantics=("parallel", "arbitrary"),
            vmem_limit_bytes=64 * 1024 * 1024),
    )(t3, s2, center)

    # ---------------- patch loss (+ fused teacher-patch sum) ----------------
    R = M * N
    t2 = teacher_patch.reshape(R, P)
    s2p = student_patch.reshape(R, P)

    # fold mask + per-sample normalisation + batch mean into a per-row weight
    mask_f = student_mask.reshape(G, B, N).astype(jnp.float32)
    msum = jnp.maximum(jnp.sum(mask_f, axis=-1, keepdims=True), 1.0)
    w_rows = (mask_f / (msum * B)).reshape(R, 1)

    Rt = _pick_patch_rows(R, P, max_patch_tile_rows)
    T = R // Rt

    patch_kernel = functools.partial(
        _patch_loss_kernel,
        inv_temp2=float(1.0 / temp2), inv_student_temp=float(1.0 / student_temp))

    loss2_part, psum_part = pl.pallas_call(
        patch_kernel,
        out_shape=(jax.ShapeDtypeStruct((T, 1, 1), jnp.float32),
                   jax.ShapeDtypeStruct((T, 1, P), jnp.float32)),
        grid=(T,),
        in_specs=[
            pl.BlockSpec((Rt, P), lambda i: (i, 0)),   # teacher patch rows
            pl.BlockSpec((Rt, P), lambda i: (i, 0)),   # student patch rows
            pl.BlockSpec((1, P), lambda i: (0, 0)),    # center2
            pl.BlockSpec((Rt, 1), lambda i: (i, 0)),   # per-row weight
        ],
        out_specs=(pl.BlockSpec((1, 1, 1), lambda i: (i, 0, 0)),
                   pl.BlockSpec((1, 1, P), lambda i: (i, 0, 0))),
        compiler_params=pltpu.CompilerParams(
            dimension_semantics=("parallel",),
            vmem_limit_bytes=64 * 1024 * 1024),
    )(t2, s2p, center2, w_rows)

    # ---------------- reductions of the tiny partials + EMA centers ----------------
    n_terms1 = G * (C - 1)
    n_terms2 = G
    total_loss1 = jnp.sum(loss1_part) / n_terms1 * lambda1
    total_loss2 = jnp.sum(loss2_part) / n_terms2 * lambda2

    # TODO(synk): dist.all_reduce across hosts omitted (world_size == 1 semantics).
    cls_center = jnp.sum(tsum_part, axis=(0, 1)) / M              # (D,)
    new_center = center * center_momentum + cls_center[None, :] * (1.0 - center_momentum)
    patch_center = jnp.sum(psum_part, axis=(0, 1)) / (N * M)      # (P,)
    new_center2 = center2 * center_momentum2 + patch_center[None, :] * (1.0 - center_momentum2)

    losses = dict(cls=total_loss1, patch=total_loss2, loss=total_loss1 + total_loss2)
    return losses, new_center, new_center2


# ----------------------------- Python wrapper -----------------------------

class IBOTLossPallas:
    def __init__(self, out_dim, patch_out_dim, ngcrops, nlcrops,
                 warmup_teacher_temp, teacher_temp,
                 warmup_teacher_temp2, teacher_temp2,
                 warmup_teacher_temp_epochs, nepochs,
                 student_temp=0.1, center_momentum=0.9, center_momentum2=0.9,
                 lambda1=1.0, lambda2=1.0, mim_start_epoch=0,
                 max_patch_tile_rows=512, max_cls_chunk_rows=256):
        self.student_temp = student_temp
        self.center_momentum = center_momentum
        self.center_momentum2 = center_momentum2
        self.ngcrops = ngcrops
        self.nlcrops = nlcrops
        self.ncrops = ngcrops + nlcrops
        self.lambda1 = lambda1
        self.lambda2 = lambda2
        self.max_patch_tile_rows = max_patch_tile_rows
        self.max_cls_chunk_rows = max_cls_chunk_rows
        # buffers (center2 stored as (1, P); equivalent to torch's (1, 1, P))
        self.center = jnp.zeros((1, out_dim), jnp.float32)
        self.center2 = jnp.zeros((1, patch_out_dim), jnp.float32)
        self.teacher_temp_schedule = np.concatenate((
            np.linspace(warmup_teacher_temp, teacher_temp, warmup_teacher_temp_epochs),
            np.ones(nepochs - warmup_teacher_temp_epochs) * teacher_temp))
        if mim_start_epoch == 0:
            self.teacher_temp2_schedule = np.concatenate((
                np.linspace(warmup_teacher_temp2, teacher_temp2, warmup_teacher_temp_epochs),
                np.ones(nepochs - warmup_teacher_temp_epochs) * teacher_temp2))
        else:
            self.teacher_temp2_schedule = np.concatenate((
                np.ones(mim_start_epoch) * warmup_teacher_temp2,
                np.linspace(warmup_teacher_temp2, teacher_temp2, warmup_teacher_temp_epochs),
                np.ones(nepochs - warmup_teacher_temp_epochs - mim_start_epoch) * teacher_temp2))
        # one jit for the whole step; temps are static (recompiles only when the
        # schedule value actually changes, i.e. at most once per warmup epoch)
        self._forward_jit = jax.jit(
            _ibot_forward,
            static_argnames=("temp", "temp2", "ngcrops", "ncrops", "student_temp",
                             "lambda1", "lambda2", "center_momentum",
                             "center_momentum2", "max_patch_tile_rows",
                             "max_cls_chunk_rows"))

    def forward(self, student_output, teacher_output, student_local_cls, student_mask, epoch):
        student_cls, student_patch = student_output
        teacher_cls, teacher_patch = teacher_output
        temp = float(self.teacher_temp_schedule[epoch])
        temp2 = float(self.teacher_temp2_schedule[epoch])
        losses, new_center, new_center2 = self._forward_jit(
            student_cls, student_local_cls, student_patch,
            teacher_cls, teacher_patch, student_mask,
            self.center, self.center2,
            temp=temp, temp2=temp2,
            ngcrops=self.ngcrops, ncrops=self.ncrops,
            student_temp=self.student_temp,
            lambda1=self.lambda1, lambda2=self.lambda2,
            center_momentum=self.center_momentum,
            center_momentum2=self.center_momentum2,
            max_patch_tile_rows=self.max_patch_tile_rows,
            max_cls_chunk_rows=self.max_cls_chunk_rows)
        self.center = new_center
        self.center2 = new_center2
        return losses


# ----------------------------- pure-JAX reference -----------------------------

def reference_ibot_loss(student_output, teacher_output, student_local_cls, student_mask,
                        epoch, module):
    student_cls, student_patch = student_output
    teacher_cls, teacher_patch = teacher_output
    student_cls = jnp.concatenate([student_cls, student_local_cls], axis=0)
    student_cls = student_cls / module.student_temp
    student_cls_c = jnp.split(student_cls, module.ncrops, axis=0)
    student_patch = student_patch / module.student_temp
    student_patch_c = jnp.split(student_patch, module.ngcrops, axis=0)

    temp = float(module.teacher_temp_schedule[epoch])
    temp2 = float(module.teacher_temp2_schedule[epoch])

    teacher_cls_c = jax.nn.softmax((teacher_cls - module.center) / temp, axis=-1)
    teacher_cls_c = jnp.split(teacher_cls_c, module.ngcrops, axis=0)
    c2 = module.center2.reshape(1, 1, -1)
    teacher_patch_c = jax.nn.softmax((teacher_patch - c2) / temp2, axis=-1)
    teacher_patch_c = jnp.split(teacher_patch_c, module.ngcrops, axis=0)

    mask_f = student_mask.reshape(module.ngcrops, student_mask.shape[1], -1).astype(jnp.float32)

    total1, n1, total2, n2 = 0.0, 0, 0.0, 0
    for q in range(len(teacher_cls_c)):
        for v in range(len(student_cls_c)):
            if v == q:
                ls = jax.nn.log_softmax(student_patch_c[v], axis=-1)
                loss2 = jnp.sum(-teacher_patch_c[q] * ls, axis=-1)
                m = mask_f[v]
                loss2 = jnp.sum(loss2 * m, axis=-1) / jnp.maximum(jnp.sum(m, axis=-1), 1.0)
                total2 += jnp.mean(loss2)
                n2 += 1
            else:
                ls = jax.nn.log_softmax(student_cls_c[v], axis=-1)
                loss1 = jnp.sum(-teacher_cls_c[q] * ls, axis=-1)
                total1 += jnp.mean(loss1)
                n1 += 1
    total1 = total1 / n1 * module.lambda1
    total2 = total2 / n2 * module.lambda2
    return dict(cls=total1, patch=total2, loss=total1 + total2)


# ----------------------------- main -----------------------------

if __name__ == "__main__":
    # small shapes (chosen so both the cls chunking and the patch row-tiling paths run)
    B = 4
    ngcrops, nlcrops = 2, 2
    ncrops = ngcrops + nlcrops
    out_dim = 128
    patch_out_dim = 128
    Hp = Wp = 4
    N = Hp * Wp
    nepochs = 10
    epoch = 3

    key = jax.random.PRNGKey(0)
    k = jax.random.split(key, 6)
    student_cls = jax.random.normal(k[0], (ngcrops * B, out_dim), jnp.float32)
    student_patch = jax.random.normal(k[1], (ngcrops * B, N, patch_out_dim), jnp.float32)
    teacher_cls = jax.random.normal(k[2], (ngcrops * B, out_dim), jnp.float32)
    teacher_patch = jax.random.normal(k[3], (ngcrops * B, N, patch_out_dim), jnp.float32)
    student_local_cls = jax.random.normal(k[4], (nlcrops * B, out_dim), jnp.float32)
    student_mask = jax.random.bernoulli(k[5], 0.4, (ngcrops, B, Hp, Wp))

    module = IBOTLossPallas(
        out_dim=out_dim, patch_out_dim=patch_out_dim,
        ngcrops=ngcrops, nlcrops=nlcrops,
        warmup_teacher_temp=0.04, teacher_temp=0.07,
        warmup_teacher_temp2=0.04, teacher_temp2=0.07,
        warmup_teacher_temp_epochs=5, nepochs=nepochs,
        max_patch_tile_rows=32,     # force multi-tile patch grid in the demo
        max_cls_chunk_rows=8)       # force 2 student-crop chunks in the demo

    # non-zero centers so centering actually matters
    module.center = 0.1 * jax.random.normal(jax.random.PRNGKey(7), (1, out_dim), jnp.float32)
    module.center2 = 0.1 * jax.random.normal(jax.random.PRNGKey(8), (1, patch_out_dim), jnp.float32)
    center_before = module.center
    center2_before = module.center2

    ref = reference_ibot_loss((student_cls, student_patch), (teacher_cls, teacher_patch),
                              student_local_cls, student_mask, epoch, module)

    out = module.forward((student_cls, student_patch), (teacher_cls, teacher_patch),
                         student_local_cls, student_mask, epoch)
    jax.block_until_ready(out["loss"])
    jax.block_until_ready(module.center)
    jax.block_until_ready(module.center2)

    # correctness check against pure-JAX reference
    for name in ("cls", "patch", "loss"):
        np.testing.assert_allclose(np.asarray(out[name]), np.asarray(ref[name]),
                                   rtol=1e-4, atol=1e-4)

    # reference EMA center update (world_size == 1)
    m1, m2 = module.center_momentum, module.center_momentum2
    ref_center = center_before * m1 + jnp.sum(teacher_cls, 0, keepdims=True) / teacher_cls.shape[0] * (1 - m1)
    ref_center2 = center2_before * m2 + jnp.sum(teacher_patch.mean(1), 0, keepdims=True) / teacher_patch.shape[0] * (1 - m2)
    np.testing.assert_allclose(np.asarray(module.center), np.asarray(ref_center), rtol=1e-5, atol=1e-5)
    np.testing.assert_allclose(np.asarray(module.center2), np.asarray(ref_center2), rtol=1e-5, atol=1e-5)

    print("KERNEL_OK")
</pallas_src>

<mosaic_0001>
module attributes {stable_mosaic.version = 11 : i64} {
  func.func @_patch_loss_kernel(%arg0: i32, %arg1: memref<32x128xf32, #tpu.memory_space<vmem>>, %arg2: memref<32x128xf32, #tpu.memory_space<vmem>>, %arg3: memref<1x128xf32, #tpu.memory_space<vmem>>, %arg4: memref<32x1xf32, #tpu.memory_space<vmem>>, %arg5: memref<1x1x1xf32, #tpu.memory_space<vmem>>, %arg6: memref<1x1x128xf32, #tpu.memory_space<vmem>>) attributes {dimension_semantics = [#tpu.dimension_semantics<parallel>], iteration_bounds = array<i64: 4>, scalar_prefetch = 0 : i64, scratch_operands = 0 : i64, tpu.core_type = #tpu.core_type<tc>, window_params = [{transform_indices = @transform_0, window_bounds = array<i64: 32, 128>}, {transform_indices = @transform_1, window_bounds = array<i64: 32, 128>}, {pipeline_mode = #tpu.pipeline_mode<synchronous>, transform_indices = @transform_2, window_bounds = array<i64: 1, 128>}, {transform_indices = @transform_3, window_bounds = array<i64: 32, 1>}, {transform_indices = @transform_4, window_bounds = array<i64: 1, 1, 1>}, {transform_indices = @transform_5, window_bounds = array<i64: 1, 1, 128>}]} {
    %c0 = arith.constant 0 : index
    %c0_0 = arith.constant 0 : index
    %0 = vector.load %arg1[%c0, %c0_0] : memref<32x128xf32, #tpu.memory_space<vmem>>, vector<32x128xf32>
    %c0_1 = arith.constant 0 : index
    %c0_2 = arith.constant 0 : index
    %1 = vector.load %arg2[%c0_1, %c0_2] : memref<32x128xf32, #tpu.memory_space<vmem>>, vector<32x128xf32>
    %c0_3 = arith.constant 0 : index
    %c0_4 = arith.constant 0 : index
    %2 = vector.load %arg3[%c0_3, %c0_4] : memref<1x128xf32, #tpu.memory_space<vmem>>, vector<1x128xf32>
    %c0_5 = arith.constant 0 : index
    %c0_6 = arith.constant 0 : index
    %3 = vector.load %arg4[%c0_5, %c0_6] : memref<32x1xf32, #tpu.memory_space<vmem>>, vector<32x1xf32>
    %cst = arith.constant dense<0.000000e+00> : vector<128xf32>
    %4 = vector.multi_reduction <add>, %0, %cst [0] : vector<32x128xf32> to vector<128xf32>
    %5 = vector.shape_cast %4 : vector<128xf32> to vector<1x128xf32>
    %6 = vector.shape_cast %5 : vector<1x128xf32> to vector<1x1x128xf32>
    %c0_7 = arith.constant 0 : index
    %c0_8 = arith.constant 0 : index
    %c0_9 = arith.constant 0 : index
    %7 = vector.load %arg6[%c0_7, %c0_8, %c0_9] : memref<1x1x128xf32, #tpu.memory_space<vmem>>, vector<1x1x128xf32>
    tpu.vector_store %arg6[%c0_7, %c0_8, %c0_9], %6 {strides = array<i32>} : memref<1x1x128xf32, #tpu.memory_space<vmem>>, vector<1x1x128xf32>,
    %8 = vector.broadcast %2 : vector<1x128xf32> to vector<32x128xf32>
    %9 = arith.subf %0, %8 : vector<32x128xf32>
    %cst_10 = arith.constant 1.600000e+01 : f32
    %10 = vector.broadcast %cst_10 : f32 to vector<32x128xf32>
    %11 = arith.mulf %9, %10 : vector<32x128xf32>
    %cst_11 = arith.constant dense<0xFF800000> : vector<32xf32>
    %12 = vector.multi_reduction <maximumf>, %11, %cst_11 [1] : vector<32x128xf32> to vector<32xf32>
    %13 = vector.shape_cast %12 : vector<32xf32> to vector<32x1xf32>
    %14 = vector.broadcast %13 : vector<32x1xf32> to vector<32x128xf32>
    %15 = arith.subf %11, %14 : vector<32x128xf32>
    %16 = math.exp %15 : vector<32x128xf32>
    %cst_12 = arith.constant dense<0.000000e+00> : vector<32xf32>
    %17 = vector.multi_reduction <add>, %16, %cst_12 [1] : vector<32x128xf32> to vector<32xf32>
    %18 = vector.shape_cast %17 : vector<32xf32> to vector<32x1xf32>
    %cst_13 = arith.constant 1.000000e+01 : f32
    %19 = vector.broadcast %cst_13 : f32 to vector<32x128xf32>
    %20 = arith.mulf %1, %19 : vector<32x128xf32>
    %cst_14 = arith.constant dense<0xFF800000> : vector<32xf32>
    %21 = vector.multi_reduction <maximumf>, %20, %cst_14 [1] : vector<32x128xf32> to vector<32xf32>
    %22 = vector.shape_cast %21 : vector<32xf32> to vector<32x1xf32>
    %23 = vector.broadcast %22 : vector<32x1xf32> to vector<32x128xf32>
    %24 = arith.subf %20, %23 : vector<32x128xf32>
    %25 = math.exp %24 : vector<32x128xf32>
    %cst_15 = arith.constant dense<0.000000e+00> : vector<32xf32>
    %26 = vector.multi_reduction <add>, %25, %cst_15 [1] : vector<32x128xf32> to vector<32xf32>
    %27 = vector.shape_cast %26 : vector<32xf32> to vector<32x1xf32>
    %28 = math.log %27 : vector<32x1xf32>
    %29 = vector.broadcast %28 : vector<32x1xf32> to vector<32x128xf32>
    %30 = arith.subf %24, %29 : vector<32x128xf32>
    %31 = arith.mulf %16, %30 : vector<32x128xf32>
    %cst_16 = arith.constant dense<0.000000e+00> : vector<32xf32>
    %32 = vector.multi_reduction <add>, %31, %cst_16 [1] : vector<32x128xf32> to vector<32xf32>
    %33 = vector.shape_cast %32 : vector<32xf32> to vector<32x1xf32>
    %cst_17 = arith.constant 0.000000e+00 : f32
    %34 = vector.broadcast %cst_17 : f32 to vector<32x1xf32>
    %35 = arith.subf %34, %33 : vector<32x1xf32>
    %36 = arith.divf %35, %18 : vector<32x1xf32>
    %cst_18 = arith.constant 0.000000e+00 : f32
    %37 = vector.broadcast %cst_18 : f32 to vector<1x1x1xf32>
    %38 = arith.mulf %36, %3 : vector<32x1xf32>
    %39 = vector.shape_cast %38 : vector<32x1xf32> to vector<1x32x1xf32>
    %cst_19 = arith.constant dense<0.000000e+00> : vector<1xf32>
    %40 = vector.multi_reduction <add>, %39, %cst_19 [1, 2] : vector<1x32x1xf32> to vector<1xf32>
    %41 = vector.shape_cast %40 : vector<1xf32> to vector<1x1x1xf32>
    %42 = vector.extract %41[0, 0, 0] : f32 from vector<1x1x1xf32>
    %43 = vector.broadcast %42 : f32 to vector<1x1x1xf32>
    %44 = arith.addf %37, %43 : vector<1x1x1xf32>
    %c0_20 = arith.constant 0 : index
    %c0_21 = arith.constant 0 : index
    %c0_22 = arith.constant 0 : index
    %45 = vector.load %arg5[%c0_20, %c0_21, %c0_22] : memref<1x1x1xf32, #tpu.memory_space<vmem>>, vector<1x1x1xf32>
    tpu.vector_store %arg5[%c0_20, %c0_21, %c0_22], %44 {strides = array<i32>} : memref<1x1x1xf32, #tpu.memory_space<vmem>>, vector<1x1x1xf32>,
    return
  }
  func.func @transform_0(%arg0: i32) -> (i32, i32) {
    %c0_i32 = arith.constant 0 : i32
    %c0_i32_0 = arith.constant 0 : i32
    return %arg0, %c0_i32 : i32, i32
  }
  func.func @transform_1(%arg0: i32) -> (i32, i32) {
    %c0_i32 = arith.constant 0 : i32
    %c0_i32_0 = arith.constant 0 : i32
    return %arg0, %c0_i32 : i32, i32
  }
  func.func @transform_2(%arg0: i32) -> (i32, i32) {
    %c0_i32 = arith.constant 0 : i32
    %c0_i32_0 = arith.constant 0 : i32
    %c0_i32_1 = arith.constant 0 : i32
    return %c0_i32, %c0_i32_0 : i32, i32
  }
  func.func @transform_3(%arg0: i32) -> (i32, i32) {
    %c0_i32 = arith.constant 0 : i32
    %c0_i32_0 = arith.constant 0 : i32
    return %arg0, %c0_i32 : i32, i32
  }
  func.func @transform_4(%arg0: i32) -> (i32, i32, i32) {
    %c0_i32 = arith.constant 0 : i32
    %c0_i32_0 = arith.constant 0 : i32
    %c0_i32_1 = arith.constant 0 : i32
    return %arg0, %c0_i32, %c0_i32_0 : i32, i32, i32
  }
  func.func @transform_5(%arg0: i32) -> (i32, i32, i32) {
    %c0_i32 = arith.constant 0 : i32
    %c0_i32_0 = arith.constant 0 : i32
    %c0_i32_1 = arith.constant 0 : i32
    return %arg0, %c0_i32, %c0_i32_0 : i32, i32, i32
  }
}

module attributes {stable_mosaic.version = 11 : i64} {
  func.func @_cls_loss_kernel(%arg0: i32, %arg1: i32, %arg2: memref<1x4x128xf32, #tpu.memory_space<vmem>>, %arg3: memref<8x128xf32, #tpu.memory_space<vmem>>, %arg4: memref<1x128xf32, #tpu.memory_space<vmem>>, %arg5: memref<1x1x1xf32, #tpu.memory_space<vmem>>, %arg6: memref<1x1x128xf32, #tpu.memory_space<vmem>>, %arg7: memref<4x128xf32, #tpu.memory_space<vmem>>, %arg8: memref<4x1xf32, #tpu.memory_space<vmem>>) attributes {dimension_semantics = [#tpu.dimension_semantics<parallel>, #tpu.dimension_semantics<arbitrary>], iteration_bounds = array<i64: 2, 2>, scalar_prefetch = 0 : i64, scratch_operands = 2 : i64, tpu.core_type = #tpu.core_type<tc>, window_params = [{transform_indices = @transform_0, window_bounds = array<i64: 1, 4, 128>}, {transform_indices = @transform_1, window_bounds = array<i64: 8, 128>}, {pipeline_mode = #tpu.pipeline_mode<synchronous>, transform_indices = @transform_2, window_bounds = array<i64: 1, 128>}, {transform_indices = @transform_3, window_bounds = array<i64: 1, 1, 1>}, {transform_indices = @transform_4, window_bounds = array<i64: 1, 1, 128>}]} {
    %c0_i32 = arith.constant 0 : i32
    %0 = arith.cmpi eq, %arg1, %c0_i32 : i32
    %1 = arith.extui %0 : i1 to i32
    %c0_i32_0 = arith.constant 0 : i32
    %2 = arith.cmpi ne, %1, %c0_i32_0 : i32
    scf.if %2 {
      %c0_27 = arith.constant 0 : index
      %c0_28 = arith.constant 0 : index
      %c0_29 = arith.constant 0 : index
      %56 = vector.load %arg2[%c0_27, %c0_28, %c0_29] : memref<1x4x128xf32, #tpu.memory_space<vmem>>, vector<1x4x128xf32>
      %57 = vector.shape_cast %56 : vector<1x4x128xf32> to vector<4x128xf32>
      %cst_30 = arith.constant dense<0.000000e+00> : vector<128xf32>
      %58 = vector.multi_reduction <add>, %57, %cst_30 [0] : vector<4x128xf32> to vector<128xf32>
      %59 = vector.shape_cast %58 : vector<128xf32> to vector<1x128xf32>
      %60 = vector.shape_cast %59 : vector<1x128xf32> to vector<1x1x128xf32>
      %c0_31 = arith.constant 0 : index
      %c0_32 = arith.constant 0 : index
      %c0_33 = arith.constant 0 : index
      %61 = vector.load %arg6[%c0_31, %c0_32, %c0_33] : memref<1x1x128xf32, #tpu.memory_space<vmem>>, vector<1x1x128xf32>
      tpu.vector_store %arg6[%c0_31, %c0_32, %c0_33], %60 {strides = array<i32>} : memref<1x1x128xf32, #tpu.memory_space<vmem>>, vector<1x1x128xf32>,
      %c0_34 = arith.constant 0 : index
      %c0_35 = arith.constant 0 : index
      %62 = vector.load %arg4[%c0_34, %c0_35] : memref<1x128xf32, #tpu.memory_space<vmem>>, vector<1x128xf32>
      %63 = vector.broadcast %62 : vector<1x128xf32> to vector<4x128xf32>
      %64 = arith.subf %57, %63 : vector<4x128xf32>
      %cst_36 = arith.constant 1.600000e+01 : f32
      %65 = vector.broadcast %cst_36 : f32 to vector<4x128xf32>
      %66 = arith.mulf %64, %65 : vector<4x128xf32>
      %cst_37 = arith.constant dense<0xFF800000> : vector<4xf32>
      %67 = vector.multi_reduction <maximumf>, %66, %cst_37 [1] : vector<4x128xf32> to vector<4xf32>
      %68 = vector.shape_cast %67 : vector<4xf32> to vector<4x1xf32>
      %69 = vector.broadcast %68 : vector<4x1xf32> to vector<4x128xf32>
      %70 = arith.subf %66, %69 : vector<4x128xf32>
      %71 = math.exp %70 : vector<4x128xf32>
      %c0_38 = arith.constant 0 : index
      %c0_39 = arith.constant 0 : index
      %72 = vector.load %arg7[%c0_38, %c0_39] : memref<4x128xf32, #tpu.memory_space<vmem>>, vector<4x128xf32>
      tpu.vector_store %arg7[%c0_38, %c0_39], %71 {strides = array<i32>} : memref<4x128xf32, #tpu.memory_space<vmem>>, vector<4x128xf32>,
      %cst_40 = arith.constant dense<0.000000e+00> : vector<4xf32>
      %73 = vector.multi_reduction <add>, %71, %cst_40 [1] : vector<4x128xf32> to vector<4xf32>
      %74 = vector.shape_cast %73 : vector<4xf32> to vector<4x1xf32>
      %c0_41 = arith.constant 0 : index
      %c0_42 = arith.constant 0 : index
      %75 = vector.load %arg8[%c0_41, %c0_42] : memref<4x1xf32, #tpu.memory_space<vmem>>, vector<4x1xf32>
      tpu.vector_store %arg8[%c0_41, %c0_42], %74 {strides = array<i32>} : memref<4x1xf32, #tpu.memory_space<vmem>>, vector<4x1xf32>,
      %cst_43 = arith.constant 0.000000e+00 : f32
      %76 = vector.broadcast %cst_43 : f32 to vector<1x1x1xf32>
      %c0_44 = arith.constant 0 : index
      %c0_45 = arith.constant 0 : index
      %c0_46 = arith.constant 0 : index
      %77 = vector.load %arg5[%c0_44, %c0_45, %c0_46] : memref<1x1x1xf32, #tpu.memory_space<vmem>>, vector<1x1x1xf32>
      tpu.vector_store %arg5[%c0_44, %c0_45, %c0_46], %76 {strides = array<i32>} : memref<1x1x1xf32, #tpu.memory_space<vmem>>, vector<1x1x1xf32>,
    } else {
    }
    %c0 = arith.constant 0 : index
    %c0_1 = arith.constant 0 : index
    %3 = vector.load %arg3[%c0, %c0_1] : memref<8x128xf32, #tpu.memory_space<vmem>>, vector<8x128xf32>
    %cst = arith.constant 1.000000e+01 : f32
    %4 = vector.broadcast %cst : f32 to vector<8x128xf32>
    %5 = arith.mulf %3, %4 : vector<8x128xf32>
    %cst_2 = arith.constant dense<0xFF800000> : vector<8xf32>
    %6 = vector.multi_reduction <maximumf>, %5, %cst_2 [1] : vector<8x128xf32> to vector<8xf32>
    %7 = vector.shape_cast %6 : vector<8xf32> to vector<8x1xf32>
    %8 = vector.broadcast %7 : vector<8x1xf32> to vector<8x128xf32>
    %9 = arith.subf %5, %8 : vector<8x128xf32>
    %10 = math.exp %9 : vector<8x128xf32>
    %cst_3 = arith.constant dense<0.000000e+00> : vector<8xf32>
    %11 = vector.multi_reduction <add>, %10, %cst_3 [1] : vector<8x128xf32> to vector<8xf32>
    %12 = vector.shape_cast %11 : vector<8xf32> to vector<8x1xf32>
    %13 = math.log %12 : vector<8x1xf32>
    %14 = vector.broadcast %13 : vector<8x1xf32> to vector<8x128xf32>
    %15 = arith.subf %9, %14 : vector<8x128xf32>
    %c0_4 = arith.constant 0 : index
    %c0_5 = arith.constant 0 : index
    %16 = vector.load %arg7[%c0_4, %c0_5] : memref<4x128xf32, #tpu.memory_space<vmem>>, vector<4x128xf32>
    %c0_6 = arith.constant 0 : index
    %c0_7 = arith.constant 0 : index
    %17 = vector.load %arg8[%c0_6, %c0_7] : memref<4x1xf32, #tpu.memory_space<vmem>>, vector<4x1xf32>
    %18 = vector.extract_strided_slice %15 {offsets = [0, 0], sizes = [4, 128], strides = [1, 1]} : vector<8x128xf32> to vector<4x128xf32>
    %19 = arith.mulf %16, %18 : vector<4x128xf32>
    %cst_8 = arith.constant dense<0.000000e+00> : vector<4xf32>
    %20 = vector.multi_reduction <add>, %19, %cst_8 [1] : vector<4x128xf32> to vector<4xf32>
    %21 = vector.shape_cast %20 : vector<4xf32> to vector<4x1xf32>
    %cst_9 = arith.constant 0.000000e+00 : f32
    %22 = vector.broadcast %cst_9 : f32 to vector<4x1xf32>
    %23 = arith.subf %22, %21 : vector<4x1xf32>
    %24 = arith.divf %23, %17 : vector<4x1xf32>
    %25 = vector.shape_cast %24 : vector<4x1xf32> to vector<1x4x1xf32>
    %cst_10 = arith.constant dense<0.000000e+00> : vector<1xf32>
    %26 = vector.multi_reduction <add>, %25, %cst_10 [1, 2] : vector<1x4x1xf32> to vector<1xf32>
    %27 = vector.shape_cast %26 : vector<1xf32> to vector<1x1x1xf32>
    %28 = vector.extract %27[0, 0, 0] : f32 from vector<1x1x1xf32>
    %cst_11 = arith.constant 4.000000e+00 : f32
    %29 = arith.divf %28, %cst_11 : f32
    %c2_i32 = arith.constant 2 : i32
    %30 = arith.muli %arg1, %c2_i32 : i32
    %c0_i32_12 = arith.constant 0 : i32
    %31 = arith.addi %30, %c0_i32_12 : i32
    %32 = arith.cmpi ne, %31, %arg0 : i32
    %cst_13 = arith.constant 0.000000e+00 : f32
    %33 = arith.select %32, %29, %cst_13 : f32
    %cst_14 = arith.constant 0.000000e+00 : f32
    %34 = arith.addf %cst_14, %33 : f32
    %35 = vector.extract_strided_slice %15 {offsets = [4, 0], sizes = [4, 128], strides = [1, 1]} : vector<8x128xf32> to vector<4x128xf32>
    %36 = arith.mulf %16, %35 : vector<4x128xf32>
    %cst_15 = arith.constant dense<0.000000e+00> : vector<4xf32>
    %37 = vector.multi_reduction <add>, %36, %cst_15 [1] : vector<4x128xf32> to vector<4xf32>
    %38 = vector.shape_cast %37 : vector<4xf32> to vector<4x1xf32>
    %cst_16 = arith.constant 0.000000e+00 : f32
    %39 = vector.broadcast %cst_16 : f32 to vector<4x1xf32>
    %40 = arith.subf %39, %38 : vector<4x1xf32>
    %41 = arith.divf %40, %17 : vector<4x1xf32>
    %42 = vector.shape_cast %41 : vector<4x1xf32> to vector<1x4x1xf32>
    %cst_17 = arith.constant dense<0.000000e+00> : vector<1xf32>
    %43 = vector.multi_reduction <add>, %42, %cst_17 [1, 2] : vector<1x4x1xf32> to vector<1xf32>
    %44 = vector.shape_cast %43 : vector<1xf32> to vector<1x1x1xf32>
    %45 = vector.extract %44[0, 0, 0] : f32 from vector<1x1x1xf32>
    %cst_18 = arith.constant 4.000000e+00 : f32
    %46 = arith.divf %45, %cst_18 : f32
    %c2_i32_19 = arith.constant 2 : i32
    %47 = arith.muli %arg1, %c2_i32_19 : i32
    %c1_i32 = arith.constant 1 : i32
    %48 = arith.addi %47, %c1_i32 : i32
    %49 = arith.cmpi ne, %48, %arg0 : i32
    %cst_20 = arith.constant 0.000000e+00 : f32
    %50 = arith.select %49, %46, %cst_20 : f32
    %51 = arith.addf %34, %50 : f32
    %c0_21 = arith.constant 0 : index
    %c0_22 = arith.constant 0 : index
    %c0_23 = arith.constant 0 : index
    %52 = vector.load %arg5[%c0_21, %c0_22, %c0_23] : memref<1x1x1xf32, #tpu.memory_space<vmem>>, vector<1x1x1xf32>
    %53 = vector.broadcast %51 : f32 to vector<1x1x1xf32>
    %54 = arith.addf %52, %53 : vector<1x1x1xf32>
    %c0_24 = arith.constant 0 : index
    %c0_25 = arith.constant 0 : index
    %c0_26 = arith.constant 0 : index
    %55 = vector.load %arg5[%c0_24, %c0_25, %c0_26] : memref<1x1x1xf32, #tpu.memory_space<vmem>>, vector<1x1x1xf32>
    tpu.vector_store %arg5[%c0_24, %c0_25, %c0_26], %54 {strides = array<i32>} : memref<1x1x1xf32, #tpu.memory_space<vmem>>, vector<1x1x1xf32>,
    return
  }
  func.func @transform_0(%arg0: i32, %arg1: i32) -> (i32, i32, i32) {
    %c0_i32 = arith.constant 0 : i32
    %c0_i32_0 = arith.constant 0 : i32
    %c0_i32_1 = arith.constant 0 : i32
    return %arg0, %c0_i32, %c0_i32_0 : i32, i32, i32
  }
  func.func @transform_1(%arg0: i32, %arg1: i32) -> (i32, i32) {
    %c0_i32 = arith.constant 0 : i32
    %c0_i32_0 = arith.constant 0 : i32
    return %arg1, %c0_i32 : i32, i32
  }
  func.func @transform_2(%arg0: i32, %arg1: i32) -> (i32, i32) {
    %c0_i32 = arith.constant 0 : i32
    %c0_i32_0 = arith.constant 0 : i32
    %c0_i32_1 = arith.constant 0 : i32
    return %c0_i32, %c0_i32_0 : i32, i32
  }
  func.func @transform_3(%arg0: i32, %arg1: i32) -> (i32, i32, i32) {
    %c0_i32 = arith.constant 0 : i32
    %c0_i32_0 = arith.constant 0 : i32
    %c0_i32_1 = arith.constant 0 : i32
    return %arg0, %c0_i32, %c0_i32_0 : i32, i32, i32
  }
  func.func @transform_4(%arg0: i32, %arg1: i32) -> (i32, i32, i32) {
    %c0_i32 = arith.constant 0 : i32
    %c0_i32_0 = arith.constant 0 : i32
    %c0_i32_1 = arith.constant 0 : i32
    return %arg0, %c0_i32, %c0_i32_0 : i32, i32, i32
  }
}

</mosaic_0001>

<bundles_post_ra>
// kernel: div.6
= control target key start
LH: loop header
LB: loop body
LE: loop exit
PB: predicated region body
PF: predicated region fallthrough
CT: control target
= control target key end

     0   :  { %s37_s0 = inlined_call_operand.vmem [shape: f32[128,1], index: 0, kind: input, shape index: {}]   ;;  %s38_s1 = inlined_call_operand.vmem [shape: f32[128,1], index: 1, kind: input, shape index: {}]   ;;  %s39_s2 = inlined_call_operand.vmem [shape: f32[128,1], index: 2, kind: output, shape index: {}]  }
   0x1   :  { %v4_v0 = vld [vmem:[%s38_s1] sm:$0x1] }
   0x2   :  { %11 = vrcp.f32 %v4_v0  ;;  %v3_v1 = vld [vmem:[%s37_s0] sm:$0x1] }
   0xc   :  { %v12_v2 = vpop.eup %11 }
   0xd   :  { %v8_v3 = vmul.f32 %v12_v2, %v3_v1 }
   0xf   :  { %10 = vst [vmem:[%s39_s2] sm:$0x1] %v8_v3 }

// kernel: _ibot_forward.2
= control target key start
LH: loop header
LB: loop body
LE: loop exit
PB: predicated region body
PF: predicated region fallthrough
CT: control target
= control target key end

     0   :  { %s1376_s0 = inlined_call_operand.hbm [shape: f32[2,4,128], index: 0, kind: input, shape index: {}]   ;;  %s1377_s1 = inlined_call_operand.hbm [shape: f32[16,128], index: 1, kind: input, shape index: {}]   ;;  %s1378_s2 = inlined_call_operand.hbm [shape: f32[1,128], index: 2, kind: input, shape index: {}]   ;;  %s1379_s3 = inlined_call_operand.hbm [shape: f32[2,1,1], index: 3, kind: output, shape index: {0}]   ;;  %s1380_s4 = inlined_call_operand.hbm [shape: f32[2,1,128], index: 4, kind: output, shape index: {1}]  }
   0x1   :  { %1391 = sst [smem:[#allocation21_spill]] %s1376_s0 }
   0x2   :  { %1392 = sst [smem:[#allocation22_spill]] %s1378_s2 }
   0x3   :  { %1393 = sst [smem:[#allocation23_spill]] %s1379_s3 }
   0x4   :  { %10 = vsyncpa [#allocation5], 0 }
   0x5   :  { %12 = vsyncpa [#allocation5 + $0x1], 0 }
   0x6   :  { %13 = vsyncpa [#allocation8], 0 }
   0x7   :  { %15 = vsyncpa [#allocation8 + $0x1], 0 }
   0x8   :  { %16 = vsyncpa [#allocation6], 0 }
   0x9   :  { %18 = vsyncpa [#allocation6 + $0x1], 0 }
   0xa   :  { %19 = vsyncpa [#allocation12], 0 }
   0xb   :  { %21 = vsyncpa [#allocation12 + $0x1], 0  ;;  %s997_s15 = smov 0   ;;  %s999_s16 = smov 0  }
   0xc   :  { %s1001_s17 = smov 0   ;;  %s1003_s18 = smov 0  }
   0xd   :  { %s1005_s19 = smov 0   ;;  %s1007_s20 = smov 0  }
   0xe   :  { %s1009_s21 = smov 0   ;;  %s1011_s22 = smov 0  }
   0xf   :  { %s1013_s23 = smov 0   ;;  %s1015_s24 = smov 0  }
  0x10   :  { %s1017_s25 = smov 0  }
  0x11 LB: > { %1394 = sst [smem:[#allocation18_spill]] %s936_s18  ;;  %s1051_s26 = sadd.s32 4294967295, %s964_s25   ;;  %s964_s25 = sphi %s1017_s25, %s27_s25   ;;  %s960_s24 = sphi %s1015_s24, %s1434_s24   ;;  %s956_s23 = sphi %s1013_s23, %s1433_s23   ;;  %s952_s22 = sphi %s1011_s22, %s1432_s22   ;;  %s948_s21 = sphi %s1009_s21, %s1431_s21   ;;  %s944_s20 = sphi %s1007_s20, %s1430_s20   ;;  %s940_s19 = sphi %s1005_s19, %s1429_s19   ;;  %s936_s18 = sphi %s1003_s18, %s1428_s18   ;;  %s932_s17 = sphi %s1001_s17, %s1427_s17   ;;  %s928_s16 = sphi %s999_s16, %s1426_s16   ;;  %s924_s15 = sphi %s997_s15, %s1425_s15  }
  0x12   : > { %s559_s27 = sadd.s32 4294967294, %s964_s25   ;;  %p59_p0 = scmp.ne.s32.totalorder %s940_s19, %s936_s18 }
  0x13   : > { %p1381_p1 = scmp.eq.s32.totalorder %s1051_s26, 0  ;;  %p85_p2 = scmp.ne.s32.totalorder %s928_s16, %s924_s15 }
  0x14   : > { %p136_p5 = scmp.eq.s32.totalorder %s559_s27, 3  ;;  %p560_p7 = scmp.ge.s32.totalorder %s964_s25, 1 }
  0x15   : > { %p1061_p4 = por %p1381_p1, %p59_p0  ;;  %p1067_p6 = por %p85_p2, %p1381_p1 }
  0x16   : > { %p1072_p8 = por %p136_p5, %p59_p0  ;;  %p169_p9 = scmp.lt.s32.totalorder %s964_s25, 5 }
  0x17   : > { %s1395_s28 = scalar_select %p1061_p4, 1, 0 }
  0x18   : > { %s1396_s29 = scalar_select %p1067_p6, 1, 0 }
  0x19   : > { %s1397_s30 = scalar_select %p1072_p8, 1, 0 }
  0x1a   : > { %p1077_p10 = pnand %p560_p7, %p169_p9  ;;  %s966_s6 = smov [#allocation9]  }
  0x1b   : > { %1398 = sst [smem:[#allocation19_spill]] %s1397_s30  ;;  %s182_s7 = sshll.u32 %s966_s6, 4  ;;  %s183_s7 = int_to_ptr.vmem [resolvable:$true] %s182_s7 }
  0x1c   : > { %s1399_s5 = scalar_select %p1077_p10, 1, 0 }
  0x1d   : > { %p594_p11 = pneg %p1077_p10  ;;  %s1401_s2 = sld [smem:[#allocation22_spill]] }
  0x1f   : > { %p1085_p12 = pnand %p594_p11, %p1381_p1 }
  0x21   : > { %p716_p2 = pneg %p1085_p12 }
  0x23   : > { %s714_s13 = scalar_lea.hbm %s1401_s2, 16 }
  0x24   : > { %p715_p0 = scmp.ne.s32.totalorder %s1401_s2, %s714_s13  ;;  %p721_p9 = scmp.lt.u32.totalorder %s714_s13, %s1401_s2 }
  0x26   : > { %p717_p5 = pnand %p716_p2, %p715_p0 }
  0x28   : > { %p718_p7 = pneg %p717_p5 }
  0x2a   : > { %p723_p11 = pnand %p721_p9, %p718_p7 }
  0x2c   : > { %726 = shalt.err (!%p723_p11)
}
  0x2d   : > { %s727_s10 = scalar_lea.vmem %s183_s7, 16  ;;  %s734_s11 = scalar_lea.vmem %s183_s7, 32 }
  0x2e   : > { %p728_p1 = scmp.ne.s32.totalorder %s183_s7, %s727_s10  ;;  %p735_p8 = scmp.lt.s32.totalorder %s183_s7, %s183_s7 }
  0x2f   : > { %p736_p6 = scmp.lt.s32.totalorder %s734_s11, %s727_s10 }
  0x30   : > { %p730_p3 = pnand %p728_p1, %p716_p2 }
  0x31   : > { %p737_p4 = por %p736_p6, %p735_p8 }
  0x32   : > { %p731_p13 = pneg %p730_p3 }
  0x34   : > { %p738_p10 = pnand %p737_p4, %p731_p13 }
  0x36   : > { %741 = shalt.err (!%p738_p10)
}
  0x37   : > { %597 = dma.hbm_to_vmem [thread:$0]  (!%p1085_p12), %s1401_s2, 16, %s183_s7, [#allocation8]  }
  0x38   : > { %p1386_p1 = scmp.eq.s32.totalorder %s964_s25, 0  ;;  %p1402_p3 = scmp.ne.s32.totalorder %s944_s20, %s940_s19 }
  0x39   : > { %p1403_p4 = scmp.eq.s32.totalorder %s1051_s26, 3  ;;  %p1385_p8 = scmp.lt.s32.totalorder %s964_s25, 4 }
  0x3a   : > { %s193_s10 = sand.u32 1, %s944_s20   ;;  %p1405_p10 = pmov %p1402_p3 }
  0x3b   : > { %p1115_p6 = por %p1403_p4, %p1402_p3  ;;  %s563_s13 = sshll.u32 %s193_s10, 2 }
  0x3c   : > { %p55_p13 = por %p1386_p1, %p1405_p10  ;;  %s564_s15 = sshll.u32 %s960_s24, 6 }
  0x3d   : > { %s1406_s0 = sld [smem:[#allocation21_spill]]  ;;  %s197_s7 = scalar_lea.vmem [#allocation4], %s563_s13 }
  0x3e   : > { %s204_s12 = sshll.u32 %s197_s7, 4  ;;  %p1134_p12 = pnand %p1385_p8, %p55_p13  ;;  %s1138_s12 = int_to_ptr.vmem [resolvable:$true] %s204_s12 }
  0x3f   : > { %s194_s9 = scalar_lea.sflag [#allocation5], %s193_s10 }
  0x40   : > { %p744_p2 = pneg %p1134_p12 }
  0x43   : > { %s1130_s11 = scalar_lea.hbm %s1406_s0, %s564_s15  ;;  %s747_s27 = scalar_lea.hbm %s1406_s0, 128 }
  0x44   : > { %s742_s2 = scalar_lea.hbm %s1130_s11, 64  ;;  %p748_p9 = scmp.lt.u32.totalorder %s1130_s11, %s1406_s0 }
  0x45   : > { %p743_p0 = scmp.ne.s32.totalorder %s1130_s11, %s742_s2  ;;  %p749_p11 = scmp.lt.u32.totalorder %s747_s27, %s742_s2 }
  0x46   : > { %p751_p4 = scmp.lt.u32.totalorder %s742_s2, %s1130_s11 }
  0x47   : > { %p745_p5 = pnand %p744_p2, %p743_p0  ;;  %p750_p3 = por %p749_p11, %p748_p9 }
  0x49   : > { %p746_p7 = pneg %p745_p5  ;;  %p752_p10 = por %p751_p4, %p750_p3 }
  0x4b   : > { %p753_p13 = pnand %p752_p10, %p746_p7 }
  0x4d   : > { %756 = shalt.err (!%p753_p13)
}
  0x4e   : > { %s757_s10 = scalar_lea.vmem %s1138_s12, 64  ;;  %s967_s13 = smov [#allocation4]  }
  0x4f   : > { %p758_p0 = scmp.ne.s32.totalorder %s1138_s12, %s757_s10  ;;  %s762_s15 = sshll.u32 %s967_s13, 4  ;;  %s763_s15 = int_to_ptr.vmem [resolvable:$false] %s762_s15 }
  0x50   : > { %s764_s6 = scalar_lea.vmem %s763_s15, 128  ;;  %p765_p1 = scmp.lt.s32.totalorder %s1138_s12, %s763_s15 }
  0x51   : > { %p760_p5 = pnand %p758_p0, %p744_p2  ;;  %p766_p9 = scmp.lt.s32.totalorder %s764_s6, %s757_s10 }
  0x53   : > { %p761_p8 = pneg %p760_p5  ;;  %p767_p11 = por %p766_p9, %p765_p1 }
  0x55   : > { %p768_p3 = pnand %p767_p11, %p761_p8 }
  0x57   : > { %771 = shalt.err (!%p768_p3)
}
  0x58   : > { %601 = dma.hbm_to_vmem [thread:$0]  (!%p1134_p12), %s1130_s11, 64, %s1138_s12, %s194_s9  }
  0x59   : > { %s36_s2 = sadd.s32 1, %s956_s23  ;;  %s72_s27 = sadd.s32 1, %s932_s17 }
  0x5a   : > { %p37_p1 = scmp.ge.s32.totalorder %s36_s2, 2  ;;  %p79_p8 = scmp.ne.s32.totalorder %s932_s17, %s928_s16 }
  0x5b   : > { %s211_s14 = sand.u32 1, %s964_s25   ;;  %s213_s7 = sand.u32 1, %s932_s17  }
  0x5c   : > { %s1436_s2 = smov (%p37_p1, %s36_s2), 0  ;;  %s1409_s10 = sadd.s32 1, %s960_s24 }
  0x5d   : > { %1408 = sst [smem:[#allocation20_spill]] %s1436_s2  ;;  %s1438_s10 = smov (!%p37_p1, %s1409_s10), %s960_s24 }
  0x5e   : > { %s69_s13 = ssub.s32 %s956_s23, %s1436_s2  ;;  %p1410_p2 = scmp.eq.s32.totalorder %s964_s25, 0 }
  0x5f   : > { %p41_p12 = scmp.ge.s32.totalorder %s1438_s10, 2  ;;  %p70_p4 = scmp.eq.s32.totalorder %s69_s13, 0 }
  0x60   : > { %p1180_p7 = por %p79_p8, %p1410_p2  ;;  %s565_s11 = sshll.u32 %s213_s7, 3 }
  0x61   : > { %s1440_s10 = smov (%p41_p12, %s1438_s10), 0  ;;  %s566_s6 = sshll.u32 %s956_s23, 7 }
  0x62   : > { %s1187_s12 = scalar_select %p70_p4, %s932_s17, %s72_s27  }
  0x63   : > { %s43_s15 = ssub.s32 %s960_s24, %s1440_s10  ;;  %s1195_s2 = scalar_lea.hbm %s1377_s1, %s566_s6 }
  0x64   : > { %p44_p10 = scmp.eq.s32.totalorder %s43_s15, 0  ;;  %s215_s18 = scalar_lea.vmem [#allocation7], %s565_s11 }
  0x65   : > { %s222_s13 = sshll.u32 %s215_s18, 4  ;;  %s1412_s7 = sadd.s32 1, %s944_s20  ;;  %s1202_s13 = int_to_ptr.vmem [resolvable:$true] %s222_s13 }
  0x66   : > { %s1200_s3 = scalar_select %p44_p10, %s944_s20, %s1412_s7  }
  0x67   : > { %p1413_p13 = scmp.lt.s32.totalorder %s964_s25, 4  ;;  %s212_s0 = scalar_lea.sflag [#allocation8], %s211_s14 }
  0x68   : > { %s772_s30 = scalar_lea.hbm %s1195_s2, 128  ;;  %s777_s9 = scalar_lea.hbm %s1377_s1, 256 }
  0x69   : > { %p1208_p0 = pnand %p1413_p13, %p1180_p7  ;;  %p773_p5 = scmp.ne.s32.totalorder %s1195_s2, %s772_s30 }
  0x6a   : > { %p778_p1 = scmp.lt.u32.totalorder %s1195_s2, %s1377_s1  ;;  %p779_p8 = scmp.lt.u32.totalorder %s777_s9, %s772_s30 }
  0x6b   : > { %p774_p9 = pneg %p1208_p0  ;;  %p781_p7 = scmp.lt.u32.totalorder %s772_s30, %s1195_s2 }
  0x6c   : > { %p780_p2 = por %p779_p8, %p778_p1 }
  0x6d   : > { %p775_p11 = pnand %p774_p9, %p773_p5 }
  0x6e   : > { %p782_p12 = por %p781_p7, %p780_p2 }
  0x6f   : > { %p776_p3 = pneg %p775_p11 }
  0x71   : > { %p783_p4 = pnand %p782_p12, %p776_p3 }
  0x73   : > { %786 = shalt.err (!%p783_p4)
}
  0x74   : > { %s787_s14 = scalar_lea.vmem %s1202_s13, 128  ;;  %s968_s7 = smov [#allocation7]  }
  0x75   : > { %p788_p10 = scmp.ne.s32.totalorder %s1202_s13, %s787_s14  ;;  %s792_s18 = sshll.u32 %s968_s7, 4  ;;  %s793_s18 = int_to_ptr.vmem [resolvable:$false] %s792_s18 }
  0x76   : > { %s794_s11 = scalar_lea.vmem %s793_s18, 256  ;;  %p795_p11 = scmp.lt.s32.totalorder %s1202_s13, %s793_s18 }
  0x77   : > { %p790_p13 = pnand %p788_p10, %p774_p9  ;;  %p796_p1 = scmp.lt.s32.totalorder %s794_s11, %s787_s14 }
  0x79   : > { %p791_p5 = pneg %p790_p13  ;;  %p797_p8 = por %p796_p1, %p795_p11 }
  0x7b   : > { %p798_p2 = pnand %p797_p8, %p791_p5 }
  0x7d   : > { %801 = shalt.err (!%p798_p2)
}
  0x7e   : > { %604 = dma.hbm_to_vmem [thread:$0]  (!%p1208_p0), %s1195_s2, 128, %s1202_s13, %s212_s0  }
  0x7f   : > { %p1415_p3 = scmp.ne.s32.totalorder %s1399_s5, 0 }
  0x80   : > { %s1240_s30 = sand.u32 (!%p1415_p3), 1, %s940_s19   ;;  %p1416_p9 = scmp.ne.s32.totalorder (!%p1415_p3), %s1395_s28, 0 }
  0x81   : > { %231 = sbr.rel (%p1415_p3) target bundleno = 1151 (0x47f), region = 32  ;;  %s568_s9 = sshll.u32 (!%p1415_p3), %s1240_s30, 2 }
  0x82   : > { %s234_s15 = scalar_lea.sflag (!%p1415_p3), [#allocation5], %s1240_s30  ;;  %s237_s6 = scalar_lea.vmem (!%p1415_p3), [#allocation4], %s568_s9 }
  0x88   : > { %903 = dma.done.wait (%p1416_p9), %s234_s15, 64  }
  0x89   : > { %905 = vsyncadd (%p1416_p9), %s234_s15, 4294967232  ;;  %s242_s2 = sand.u32 1, %s1051_s26   ;;  %s244_s5 = sand.u32 1, %s928_s16  }
  0x8a   : > { %s1250_s13 = sshll.u32 %s244_s5, 3  ;;  %s243_s27 = scalar_lea.sflag [#allocation8], %s242_s2 }
  0x8b   : > { %s246_s0 = scalar_lea.vmem [#allocation7], %s1250_s13  ;;  %p1417_p0 = scmp.ne.s32.totalorder %s1396_s29, 0 }
  0x8d   : > { %907 = dma.done.wait (%p1417_p0), %s243_s27, 128  }
  0x8e   : > { %909 = vsyncadd (%p1417_p0), %s243_s27, 4294967168  ;;  %p1418_p7 = scmp.eq.s32.totalorder %s1051_s26, 0 }
  0x90   : > { %911 = dma.done.wait (%p1418_p7), [#allocation8], 16   ;;  %p1419_p12 = pmov %p1418_p7 }
  0x91   : > { %s1262_s28 = scalar_lea.vmem [#allocation10], %s1240_s30  ;;  %s282_s14 = scalar_lea.vmem [#allocation11], %s1240_s30 }
  0x92   : > { %913 = vsyncadd (%p1419_p12), [#allocation8], 4294967280  ;;  %p571_p4 = scmp.ne.s32.totalorder %s948_s21, 0 }
  0x93   : > { %v287_v0 = vld [vmem:[%s237_s6] sm:$0xf] (!%p571_p4)  ;;  %vm288_vm0 = vcmask (!%p571_p4), 1043456   ;;  %v572_v1 = vld [vmem:[#allocation9] ss:$0 sm:$0xff] (!%p571_p4)  ;;  %vm318_vm1 = vcmask (!%p571_p4), 0  }
  0x94   : > { %286 = sbr.rel (%p571_p4) target bundleno = 454 (0x1c6), region = 48  ;;  %v304_v2 = vsub.f32 (!%p571_p4), %v287_v0, %v572_v1  ;;  %v289_v3 = vsel (!%p571_p4), %vm288_vm0, %v287_v0, 0.0  ;;  %v969_v17 = vmov (!%p571_p4), 0.0   ;;  %vm316_vm2 = vcmask (!%p571_p4), 3072  }
  0x95   : > { %v290_v4 = vrot.slane (!%p571_p4), %v289_v3, 4  ;;  %319 = vst.msk [vmem:[%s1262_s28] sm:$0x1] (!%p571_p4), %vm318_vm1, %v969_v17 }
  0x96   : > { %v305_v5 = vmul.f32 (!%p571_p4), 16.0, %v304_v2 }
  0x97   : > { %v291_v6 = vadd.f32 (!%p571_p4), %v290_v4, %v289_v3 }
  0x98   : > { %v306_v7 = vsel (!%p571_p4), %vm288_vm0, %v305_v5, -inf }
  0x99   : > { %307 = vmax.xlane.f32.xlu0 (!%p571_p4), %v306_v7  ;;  %v292_v8 = vrot.slane (!%p571_p4), %v291_v6, 2 }
  0x9b   : > { %v293_v9 = vadd.f32 %v292_v8, %v291_v6 }
  0x9d   : > { %v294_v10 = vrot.slane %v293_v9, 1 }
  0x9f   : > { %v295_v11 = vadd.f32 %v294_v10, %v293_v9 }
  0xa1   : > { %296 = vst [vmem:[%s282_s14] sm:$0x1] %v295_v11 }
 0x126   : > { %v308_v12 = vpop.xlane.xlu0 %307 }
 0x127   : > { %v309_v13 = vsub.f32 %v305_v5, %v308_v12 }
 0x129   : > { %v310_v14 = vmul.f32 1.442695, %v309_v13 }
 0x12b   : > { %706 = vpow2.f32 %v310_v14 }
 0x135   : > { %v707_v15 = vpop.eup %706 }
 0x136   : > { %312 = vst [vmem:[#allocation2] sm:$0xf] %v707_v15  ;;  %v313_v16 = vsel %vm288_vm0, %v707_v15, 0.0 }
 0x137   : > { %314 = vadd.xlane.f32.xlu0 %v313_v16 }
 0x1c4   : > { %v315_v18 = vpop.xlane.xlu0 %314 }
 0x1c5   : > { %317 = vst.msk [vmem:[#allocation3] sm:$0xf] %vm316_vm2, %v315_v18 }
 0x1c6 PF: > { %v320_v19 = vld [vmem:[%s246_s0] sm:$0xff]  ;;  %v332_v28 = vld [vmem:[#allocation2] sm:$0xf]  ;;  %vm335_vm3 = vcmask 1043456   ;;  %vm342_vm4 = vcmask 3072   ;;  %s574_s26 = sshll.u32 %s952_s22, 4 }
 0x1c7   : > { %v321_v20 = vmul.f32 10.0, %v320_v19  ;;  %s1280_s18 = scalar_lea.hbm %s1380_s4, %s574_s26  ;;  %s421_s11 = sshll.u32 %s282_s14, 4  ;;  %s422_s11 = int_to_ptr.vmem [resolvable:$true] %s421_s11 }
 0x1c8   : > { %s396_s9 = scalar_lea.sflag [#allocation12], %s1240_s30  ;;  %s802_s15 = scalar_lea.vmem %s422_s11, 16 }
 0x1c9   : > { %322 = vmax.xlane.f32.xlu0 %v321_v20  ;;  %p803_p10 = scmp.ne.s32.totalorder %s422_s11, %s802_s15  ;;  %s970_s6 = smov [#allocation11]  }
 0x1ca   : > { %s806_s2 = sshll.u32 %s970_s6, 4  ;;  %s807_s2 = int_to_ptr.vmem [resolvable:$false] %s806_s2 }
 0x1cb   : > { %p804_p13 = pnand %p803_p10, %p1115_p6  ;;  %s808_s5 = scalar_lea.vmem %s807_s2, 32 }
 0x1cc   : > { %v333_v35 = vld [vmem:[#allocation3] sm:$0xf]  ;;  %p809_p11 = scmp.lt.s32.totalorder %s422_s11, %s807_s2  ;;  %p810_p1 = scmp.lt.s32.totalorder %s808_s5, %s802_s15 }
 0x1cd   : > { %p805_p5 = pneg %p804_p13 }
 0x1ce   : > { %p811_p8 = por %p810_p1, %p809_p11 }
 0x1d0   : > { %p812_p2 = pnand %p811_p8, %p805_p5 }
 0x256   : > { %v323_v21 = vpop.xlane.xlu0 %322 }
 0x257   : > { %v324_v22 = vsub.f32 %v321_v20, %v323_v21 }
 0x259   : > { %v325_v23 = vmul.f32 1.442695, %v324_v22 }
 0x25b   : > { %708 = vpow2.f32 %v325_v23 }
 0x265   : > { %v709_v24 = vpop.eup %708 }
 0x266   : > { %327 = vadd.xlane.f32.xlu0 %v709_v24 }
 0x2f3   : > { %v328_v25 = vpop.xlane.xlu0 %327 }
 0x2f4   : > { %710 = vlog2.f32 %v328_v25 }
 0x2f5   : > { %712 = vrcp.f32 %v333_v35 }
 0x2fe   : > { %v711_v26 = vpop.eup %710 }
 0x2ff   : > { %v330_v27 = vmul.f32 0.6931472, %v711_v26  ;;  %v713_v36 = vpop.eup %712 }
 0x301   : > { %v331_v29 = vsub.f32 %v324_v22, %v330_v27 }
 0x303   : > { %v334_v30 = vmul.f32 %v332_v28, %v331_v29  ;;  %v361_v31 = vrot.slane %v331_v29, 4 }
 0x305   : > { %v336_v32 = vsel %vm335_vm3, %v334_v30, 0.0  ;;  %v363_v33 = vmul.f32 %v361_v31, %v332_v28 }
 0x306   : > { %337 = vadd.xlane.f32.xlu1 %v336_v32 }
 0x307   : > { %v364_v34 = vsel %vm335_vm3, %v363_v33, 0.0 }
 0x30a   : > { %365 = vadd.xlane.f32.xlu1 %v364_v34 }
 0x393   : > { %v338_v37 = vpop.xlane.xlu1 %337 }
 0x394   : > { %v339_v38 = vsub.f32 0.0, %v338_v37 }
 0x396   : > { %v341_v39 = vmul.f32 %v713_v36, %v339_v38 }
 0x397   : > { %v366_v40 = vpop.xlane.xlu1 %365 }
 0x398   : > { %v367_v41 = vsub.f32 0.0, %v366_v40  ;;  %v343_v42 = vsel %vm342_vm4, %v341_v39, 0.0 }
 0x399   : > { %344 = vadd.xlane.f32.xlu0 %v343_v42 }
 0x39a   : > { %v368_v43 = vmul.f32 %v713_v36, %v367_v41 }
 0x39c   : > { %v369_v44 = vsel %vm342_vm4, %v368_v43, 0.0 }
 0x39d   : > { %370 = vadd.xlane.f32.xlu1 %v369_v44 }
 0x39e   : > { %815 = shalt.err (!%p812_p2)
}
 0x39f   : > { %s816_s13 = scalar_lea.hbm %s1280_s18, 16  ;;  %s820_s14 = scalar_lea.hbm %s1380_s4, 32 }
 0x3a0   : > { %p817_p3 = scmp.ne.s32.totalorder %s1280_s18, %s816_s13  ;;  %p821_p7 = scmp.lt.u32.totalorder %s1280_s18, %s1380_s4 }
 0x3a1   : > { %p822_p12 = scmp.lt.u32.totalorder %s820_s14, %s816_s13  ;;  %p824_p10 = scmp.lt.u32.totalorder %s816_s13, %s1280_s18 }
 0x3a2   : > { %p818_p9 = pnand %p817_p3, %p1115_p6 }
 0x3a3   : > { %p823_p4 = por %p822_p12, %p821_p7 }
 0x3a4   : > { %p819_p0 = pneg %p818_p9 }
 0x3a5   : > { %p825_p13 = por %p824_p10, %p823_p4 }
 0x3a7   : > { %p826_p5 = pnand %p825_p13, %p819_p0 }
 0x3a9   : > { %829 = shalt.err (!%p826_p5)
}
 0x3aa   : > { %591 = dma.vmem_to_hbm [thread:$0]  (%p1115_p6), %s422_s11, 16, %s1280_s18, %s396_s9   ;;  %v386_v59 = vld [vmem:[%s1262_s28] sm:$0x1]  ;;  %vm389_vm5 = vcmask 0  }
 0x3ab   : > { %s573_s18 = sshll.u32 %s948_s21, 1  ;;  %s408_s13 = sshll.u32 %s1262_s28, 4  ;;  %s1314_s13 = int_to_ptr.vmem [resolvable:$true] %s408_s13 }
 0x3ac   : > { %s382_s9 = sadd.s32 1, %s573_s18  ;;  %p357_p11 = scmp.ne.s32.totalorder %s573_s18, %s952_s22 }
 0x3ad   : > { %p383_p1 = scmp.ne.s32.totalorder %s382_s9, %s952_s22  ;;  %s1420_s0 = sld [smem:[#allocation23_spill]] }
 0x3ae   : > { %s392_s29 = scalar_lea.sflag [#allocation6], %s1240_s30  ;;  %s830_s7 = scalar_lea.vmem %s1314_s13, 16 }
 0x3af   : > { %p831_p8 = scmp.ne.s32.totalorder %s1314_s13, %s830_s7  ;;  %s971_s18 = smov [#allocation10]  }
 0x3b1   : > { %p832_p2 = pnand %p831_p8, %p1115_p6 }
 0x3b3   : > { %s1312_s14 = scalar_lea.hbm %s1420_s0, %s574_s26  ;;  %p833_p3 = pneg %p832_p2 }
 0x426   : > { %v345_v45 = vpop.xlane.xlu0 %344 }
 0x427   : > { %v346_v46 = vrot.slane %v345_v45, 4 }
 0x429   : > { %v347_v47 = vadd.f32 %v346_v46, %v345_v45 }
 0x42a   : > { %v371_v48 = vpop.xlane.xlu1 %370 }
 0x42b   : > { %v348_v49 = vrot.slane %v347_v47, 2  ;;  %v372_v50 = vrot.slane %v371_v48, 4 }
 0x42d   : > { %v373_v51 = vadd.f32 %v372_v50, %v371_v48  ;;  %v349_v52 = vadd.f32 %v348_v49, %v347_v47 }
 0x42f   : > { %v374_v53 = vrot.slane %v373_v51, 2  ;;  %v350_v54 = vrot.slane %v349_v52, 1 }
 0x431   : > { %v375_v55 = vadd.f32 %v374_v53, %v373_v51  ;;  %v351_v56 = vadd.f32 %v350_v54, %v349_v52 }
 0x433   : > { %578 = vpush %v351_v56  ;;  %v376_v57 = vrot.slane %v375_v55, 1 }
 0x435   : > { %v377_v58 = vadd.f32 %v376_v57, %v375_v55 }
 0x437   : > { %580 = vpush %v377_v58 }
 0x464   : > { %s579_s11 = spop %578 }
 0x465   : > { %s355_s15 = smul.f32 0.25, %s579_s11  ;;  %s834_s11 = sshll.u32 %s971_s18, 4  ;;  %s835_s11 = int_to_ptr.vmem [resolvable:$false] %s834_s11 }
 0x466   : > { %s836_s22 = scalar_lea.vmem %s835_s11, 32  ;;  %p837_p9 = scmp.lt.s32.totalorder %s1314_s13, %s835_s11 }
 0x467   : > { %s1442_s15 = smov (!%p357_p11, %s355_s15), 0.0  ;;  %p838_p0 = scmp.lt.s32.totalorder %s836_s22, %s830_s7 }
 0x468   : > { %s581_s6 = spop %580 }
 0x469   : > { %s381_s2 = smul.f32 0.25, %s581_s6  ;;  %p839_p7 = por %p838_p0, %p837_p9 }
 0x46b   : > { %s1444_s2 = smov (!%p383_p1, %s381_s2), 0.0  ;;  %p840_p12 = pnand %p839_p7, %p833_p3 }
 0x46c   : > { %s385_s5 = sadd.f32 %s1444_s2, %s1442_s15 }
 0x46e   : > { %v387_v60 = vstv %s385_s5 }
 0x46f   : > { %v388_v61 = vadd.f32 %v387_v60, %v386_v59 }
 0x471   : > { %390 = vst.msk [vmem:[%s1262_s28] sm:$0x1] %vm389_vm5, %v388_v61 }
 0x472   : > { %843 = shalt.err (!%p840_p12)
}
 0x473   : > { %s844_s30 = scalar_lea.hbm %s1312_s14, 16  ;;  %s848_s9 = scalar_lea.hbm %s1420_s0, 32 }
 0x474   : > { %p845_p4 = scmp.ne.s32.totalorder %s1312_s14, %s844_s30  ;;  %p849_p5 = scmp.lt.u32.totalorder %s1312_s14, %s1420_s0 }
 0x475   : > { %p850_p11 = scmp.lt.u32.totalorder %s848_s9, %s844_s30  ;;  %p852_p8 = scmp.lt.u32.totalorder %s844_s30, %s1312_s14 }
 0x476   : > { %p846_p10 = pnand %p845_p4, %p1115_p6 }
 0x477   : > { %p851_p1 = por %p850_p11, %p849_p5 }
 0x478   : > { %p847_p13 = pneg %p846_p10 }
 0x479   : > { %p853_p2 = por %p852_p8, %p851_p1 }
 0x47b   : > { %p854_p3 = pnand %p853_p2, %p847_p13 }
 0x47d   : > { %857 = shalt.err (!%p854_p3)
}
 0x47e   : > { %590 = dma.vmem_to_hbm [thread:$0]  (%p1115_p6), %s1314_s13, 16, %s1312_s14, %s392_s29  }
 0x47f PF: > { %s1421_s2 = sld [smem:[#allocation18_spill]]  ;;  %s1422_s5 = sld [smem:[#allocation19_spill]] }
 0x480   : > { %p615_p9 = scmp.ge.s32.totalorder %s964_s25, 2 }
 0x485   : > { %s433_s21 = sand.u32 1, %s1421_s2   ;;  %p1423_p0 = scmp.ne.s32.totalorder %s1422_s5, 0 }
 0x486   : > { %s434_s27 = scalar_lea.sflag [#allocation6], %s433_s21 }
 0x487   : > { %p606_p7 = pnand %p615_p9, %p1423_p0 }
 0x489   : > { %915 = dma.done.wait (!%p606_p7), %s434_s27, 16  }
 0x48a   : > { %917 = vsyncadd (!%p606_p7), %s434_s27, 4294967280  ;;  %s442_s7 = scalar_lea.sflag [#allocation12], %s433_s21 }
 0x48b   : > { %919 = dma.done.wait (!%p606_p7), %s442_s7, 16  }
 0x48c   : > { %921 = vsyncadd (!%p606_p7), %s442_s7, 4294967280  ;;  %s27_s25 = sadd.s32 1, %s964_s25   ;;  %s1424_s8 = sld [smem:[#allocation20_spill]] }
 0x48d   : > { %p24_p12 = scmp.ge.s32.totalorder %s27_s25, 6   ;;  %s1425_s15 = smov %s928_s16 }
 0x48e   : > { %s1426_s16 = smov %s932_s17  ;;  %s1427_s17 = smov %s1187_s12 }
 0x48f   : > { %s1428_s18 = smov %s940_s19  ;;  %s1429_s19 = smov %s944_s20 }
 0x490   : > { %s1430_s20 = smov %s1200_s3  ;;  %s1431_s21 = smov %s956_s23 }
 0x491   : > { %s1432_s22 = smov %s960_s24  ;;  %s1434_s24 = smov %s1440_s10 }
 0x492   : > { %s1433_s23 = smov %s1424_s8  ;;  %26 = sbr.rel (!%p24_p12) target bundleno = 17 (0x11), region = 115 }
 0x499   :  { %446 = vsyncpa [#allocation5], 1 }
 0x49a   :  { %448 = vsyncpa [#allocation5 + $0x1], 1 }
 0x49b   :  { %449 = vsyncpa [#allocation8], 1 }
 0x49c   :  { %451 = vsyncpa [#allocation8 + $0x1], 1 }
 0x49d   :  { %452 = vsyncpa [#allocation6], 1 }
 0x49e   :  { %454 = vsyncpa [#allocation6 + $0x1], 1 }
 0x49f   :  { %455 = vsyncpa [#allocation12], 1 }
 0x4a0   :  { %457 = vsyncpa [#allocation12 + $0x1], 1 }

// kernel: _ibot_forward.3
= control target key start
LH: loop header
LB: loop body
LE: loop exit
PB: predicated region body
PF: predicated region fallthrough
CT: control target
= control target key end

     0   :  { %s1430_s0 = inlined_call_operand.hbm [shape: f32[128,128], index: 0, kind: input, shape index: {}]   ;;  %s1431_s1 = inlined_call_operand.hbm [shape: f32[128,128], index: 1, kind: input, shape index: {}]   ;;  %s1432_s2 = inlined_call_operand.hbm [shape: f32[1,128], index: 2, kind: input, shape index: {}]   ;;  %s1433_s3 = inlined_call_operand.hbm [shape: f32[128,1], index: 3, kind: input, shape index: {}]   ;;  %s1434_s4 = inlined_call_operand.hbm [shape: f32[4,1,1], index: 4, kind: output, shape index: {0}]   ;;  %s1435_s5 = inlined_call_operand.hbm [shape: f32[4,1,128], index: 5, kind: output, shape index: {1}]  }
   0x1   :  { %1442 = sst [smem:[#allocation21_spill]] %s1430_s0 }
   0x2   :  { %1443 = sst [smem:[#allocation22_spill]] %s1432_s2 }
   0x3   :  { %11 = vsyncpa [#allocation3], 0 }
   0x4   :  { %13 = vsyncpa [#allocation3 + $0x1], 0 }
   0x5   :  { %14 = vsyncpa [#allocation6], 0 }
   0x6   :  { %16 = vsyncpa [#allocation6 + $0x1], 0 }
   0x7   :  { %17 = vsyncpa [#allocation9], 0 }
   0x8   :  { %19 = vsyncpa [#allocation9 + $0x1], 0 }
   0x9   :  { %20 = vsyncpa [#allocation4], 0 }
   0xa   :  { %22 = vsyncpa [#allocation4 + $0x1], 0 }
   0xb   :  { %23 = vsyncpa [#allocation12], 0 }
   0xc   :  { %25 = vsyncpa [#allocation12 + $0x1], 0  ;;  %s1086_s18 = smov 0   ;;  %s1088_s19 = smov 0  }
   0xd   :  { %s1090_s20 = smov 0   ;;  %s1092_s21 = smov 0  }
   0xe LB: > { %1444 = sst [smem:[#allocation19_spill]] %s1042_s20  ;;  %s1107_s22 = sadd.s32 4294967295, %s1046_s21   ;;  %s1046_s21 = sphi %s1092_s21, %s1468_s21   ;;  %s1042_s20 = sphi %s1090_s20, %s1465_s20   ;;  %s1038_s19 = sphi %s1088_s19, %s1467_s19   ;;  %s1034_s18 = sphi %s1086_s18, %s1466_s18  }
   0xf   : > { %s684_s23 = sadd.s32 4294967294, %s1046_s21   ;;  %s1111_s24 = sadd.s32 1, %s1046_s21  }
  0x10   : > { %s38_s25 = sadd.s32 1, %s1042_s20  ;;  %s35_s26 = ssub.s32 %s1046_s21, %s1111_s24 }
  0x11   : > { %p45_p0 = scmp.ne.s32.totalorder %s1042_s20, %s1038_s19  ;;  %p36_p1 = scmp.eq.s32.totalorder %s35_s26, 0 }
  0x12   : > { %p46_p2 = scmp.eq.s32.totalorder %s1046_s21, 0  ;;  %p51_p3 = scmp.ne.s32.totalorder %s1038_s19, %s1034_s18 }
  0x13   : > { %p1436_p4 = scmp.eq.s32.totalorder %s1107_s22, 0  ;;  %p148_p7 = scmp.eq.s32.totalorder %s1107_s22, 3 }
  0x14   : > { %s1123_s27 = scalar_select %p36_p1, %s1042_s20, %s38_s25  }
  0x15   : > { %p1125_p5 = por %p46_p2, %p45_p0  ;;  %p1131_p6 = por %p1436_p4, %p51_p3 }
  0x16   : > { %1445 = sst [smem:[#allocation20_spill]] %s1123_s27  ;;  %p154_p8 = scmp.eq.s32.totalorder %s684_s23, 3 }
  0x17   : > { %s1447_s29 = scalar_select %p1131_p6, 1, 0 }
  0x18   : > { %p685_p9 = scmp.ge.s32.totalorder %s1046_s21, 1  ;;  %p187_p10 = scmp.lt.s32.totalorder %s1046_s21, 5 }
  0x19   : > { %p1138_p11 = por %p148_p7, %p45_p0  ;;  %p1142_p12 = por %p154_p8, %p51_p3 }
  0x1a   : > { %p1146_p13 = pnand %p685_p9, %p187_p10  ;;  %s1048_s8 = smov [#allocation7]  }
  0x1b   : > { %s1448_s30 = scalar_select %p1138_p11, 1, 0 }
  0x1c   : > { %s1449_s6 = scalar_select %p1142_p12, 1, 0 }
  0x1d   : > { %s1450_s7 = scalar_select %p1146_p13, 1, 0 }
  0x1e   : > { %p726_p1 = pneg %p1146_p13  ;;  %s200_s9 = sshll.u32 %s1048_s8, 4  ;;  %s201_s9 = int_to_ptr.vmem [resolvable:$true] %s200_s9 }
  0x1f   : > { %p748_p2 = scmp.lt.s32.totalorder %s1046_s21, 4  ;;  %s1160_s11 = sand.u32 1, %s1042_s20  }
  0x20   : > { %p1155_p0 = pnand %p726_p1, %p1436_p4  ;;  %s1169_s13 = sshll.u32 %s1160_s11, 5 }
  0x21   : > { %p1164_p3 = pnand %p748_p2, %p1125_p5  ;;  %s1453_s2 = sld [smem:[#allocation22_spill]] }
  0x22   : > { %p820_p8 = pneg %p1155_p0 }
  0x23   : > { %s1452_s12 = scalar_select %p1164_p3, 1, 0 }
  0x27   : > { %s818_s16 = scalar_lea.hbm %s1453_s2, 16 }
  0x28   : > { %p819_p7 = scmp.ne.s32.totalorder %s1453_s2, %s818_s16  ;;  %p825_p5 = scmp.lt.u32.totalorder %s818_s16, %s1453_s2 }
  0x2a   : > { %p821_p9 = pnand %p820_p8, %p819_p7 }
  0x2c   : > { %p822_p10 = pneg %p821_p9 }
  0x2e   : > { %p827_p1 = pnand %p825_p5, %p822_p10 }
  0x30   : > { %830 = shalt.err (!%p827_p1)
}
  0x31   : > { %s831_s28 = scalar_lea.vmem %s201_s9, 16  ;;  %s838_s8 = scalar_lea.vmem %s201_s9, 32 }
  0x32   : > { %p832_p2 = scmp.ne.s32.totalorder %s201_s9, %s831_s28  ;;  %p839_p11 = scmp.lt.s32.totalorder %s201_s9, %s201_s9 }
  0x33   : > { %p840_p6 = scmp.lt.s32.totalorder %s838_s8, %s831_s28 }
  0x34   : > { %p834_p4 = pnand %p832_p2, %p820_p8 }
  0x35   : > { %p841_p13 = por %p840_p6, %p839_p11 }
  0x36   : > { %p835_p12 = pneg %p834_p4 }
  0x38   : > { %p842_p3 = pnand %p841_p13, %p835_p12 }
  0x3a   : > { %845 = shalt.err (!%p842_p3)
}
  0x3b   : > { %729 = dma.hbm_to_vmem [thread:$0]  (!%p1155_p0), %s1453_s2, 16, %s201_s9, [#allocation6]  }
  0x3c   : > { %s1188_s16 = sshll.u32 %s1046_s21, 9  ;;  %s215_s17 = scalar_lea.vmem [#allocation2], %s1169_s13 }
  0x3d   : > { %s222_s23 = sshll.u32 %s215_s17, 4  ;;  %s1454_s0 = sld [smem:[#allocation21_spill]]  ;;  %s1197_s23 = int_to_ptr.vmem [resolvable:$true] %s222_s23 }
  0x3e   : > { %p1455_p6 = scmp.ne.s32.totalorder %s1452_s12, 0 }
  0x40   : > { %p1204_p11 = pneg %p1455_p6 }
  0x43   : > { %s1195_s28 = scalar_lea.hbm %s1454_s0, %s1188_s16  ;;  %s851_s17 = scalar_lea.hbm %s1454_s0, 2048 }
  0x44   : > { %s846_s8 = scalar_lea.hbm %s1195_s28, 512  ;;  %p852_p0 = scmp.lt.u32.totalorder %s1195_s28, %s1454_s0 }
  0x45   : > { %p847_p4 = scmp.ne.s32.totalorder %s1195_s28, %s846_s8  ;;  %p853_p3 = scmp.lt.u32.totalorder %s851_s17, %s846_s8 }
  0x46   : > { %p855_p8 = scmp.lt.u32.totalorder %s846_s8, %s1195_s28 }
  0x47   : > { %p849_p12 = pnand %p1204_p11, %p847_p4  ;;  %p854_p7 = por %p853_p3, %p852_p0 }
  0x49   : > { %p850_p13 = pneg %p849_p12  ;;  %p856_p9 = por %p855_p8, %p854_p7 }
  0x4b   : > { %p857_p10 = pnand %p856_p9, %p850_p13 }
  0x4d   : > { %860 = shalt.err (!%p857_p10)
}
  0x4e   : > { %s861_s10 = scalar_lea.vmem %s1197_s23, 512  ;;  %s1049_s14 = smov [#allocation2]  }
  0x4f   : > { %p862_p5 = scmp.ne.s32.totalorder %s1197_s23, %s861_s10  ;;  %s866_s15 = sshll.u32 %s1049_s14, 4  ;;  %s867_s15 = int_to_ptr.vmem [resolvable:$false] %s866_s15 }
  0x50   : > { %s868_s25 = scalar_lea.vmem %s867_s15, 1024  ;;  %p869_p4 = scmp.lt.s32.totalorder %s1197_s23, %s867_s15 }
  0x51   : > { %p864_p1 = pnand %p862_p5, %p1204_p11  ;;  %p870_p12 = scmp.lt.s32.totalorder %s868_s25, %s861_s10 }
  0x53   : > { %p865_p2 = pneg %p864_p1  ;;  %p871_p0 = por %p870_p12, %p869_p4 }
  0x55   : > { %p872_p3 = pnand %p871_p0, %p865_p2 }
  0x57   : > { %875 = shalt.err (!%p872_p3)
}
  0x58   : > { %s1050_s8 = smov 128   ;;  %s1051_s17 = smov 8  }
  0x59   : > { %s1457_s26 = scalar_lea.sflag [#allocation3], %s1160_s11  ;;  %s232_s10 = sand.u32 1, %s1046_s21  }
  0x5a   : > { %733 = dma.hbm_to_vmem [thread:$0]  (!%p1455_p6), %s1195_s28, 512, %s1197_s23, %s1457_s26, %s1050_s8, %s1050_s8, %s1051_s17  }
  0x5b   : > { %s1237_s25 = scalar_lea.hbm %s1431_s1, %s1188_s16  ;;  %s236_s0 = scalar_lea.vmem [#allocation5], %s1169_s13 }
  0x5c   : > { %s243_s2 = sshll.u32 %s236_s0, 4  ;;  %s1242_s27 = scalar_lea.sflag [#allocation6], %s232_s10  ;;  %s1240_s2 = int_to_ptr.vmem [resolvable:$true] %s243_s2 }
  0x5d   : > { %s876_s20 = scalar_lea.hbm %s1237_s25, 512  ;;  %s881_s26 = scalar_lea.hbm %s1431_s1, 2048 }
  0x5e   : > { %p877_p13 = scmp.ne.s32.totalorder %s1237_s25, %s876_s20  ;;  %p882_p9 = scmp.lt.u32.totalorder %s1237_s25, %s1431_s1 }
  0x5f   : > { %p883_p10 = scmp.lt.u32.totalorder %s881_s26, %s876_s20  ;;  %p885_p1 = scmp.lt.u32.totalorder %s876_s20, %s1237_s25 }
  0x60   : > { %p879_p7 = pnand %p877_p13, %p1204_p11 }
  0x61   : > { %p884_p5 = por %p883_p10, %p882_p9 }
  0x62   : > { %p880_p8 = pneg %p879_p7 }
  0x63   : > { %p886_p2 = por %p885_p1, %p884_p5 }
  0x65   : > { %p887_p4 = pnand %p886_p2, %p880_p8 }
  0x67   : > { %890 = shalt.err (!%p887_p4)
}
  0x68   : > { %s891_s0 = scalar_lea.vmem %s1240_s2, 512  ;;  %s1052_s10 = smov [#allocation5]  }
  0x69   : > { %p892_p12 = scmp.ne.s32.totalorder %s1240_s2, %s891_s0  ;;  %s896_s23 = sshll.u32 %s1052_s10, 4  ;;  %s897_s23 = int_to_ptr.vmem [resolvable:$false] %s896_s23 }
  0x6a   : > { %s898_s28 = scalar_lea.vmem %s897_s23, 1024  ;;  %p899_p13 = scmp.lt.s32.totalorder %s1240_s2, %s897_s23 }
  0x6b   : > { %p894_p0 = pnand %p892_p12, %p1204_p11  ;;  %p900_p7 = scmp.lt.s32.totalorder %s898_s28, %s891_s0 }
  0x6d   : > { %p895_p3 = pneg %p894_p0  ;;  %p901_p9 = por %p900_p7, %p899_p13 }
  0x6f   : > { %p902_p10 = pnand %p901_p9, %p895_p3 }
  0x71   : > { %905 = shalt.err (!%p902_p10)
}
  0x72   : > { %736 = dma.hbm_to_vmem [thread:$0]  (!%p1455_p6), %s1237_s25, 512, %s1240_s2, %s1242_s27, %s1050_s8, %s1050_s8, %s1051_s17  }
  0x73   : > { %s1273_s14 = scalar_lea.hbm %s1433_s3, %s1188_s16  ;;  %s257_s15 = scalar_lea.vmem [#allocation8], %s1169_s13 }
  0x74   : > { %s264_s0 = sshll.u32 %s257_s15, 4  ;;  %s254_s10 = scalar_lea.sflag [#allocation9], %s1160_s11  ;;  %s1276_s0 = int_to_ptr.vmem [resolvable:$true] %s264_s0 }
  0x75   : > { %s906_s23 = scalar_lea.hbm %s1273_s14, 512  ;;  %s911_s25 = scalar_lea.hbm %s1433_s3, 2048 }
  0x76   : > { %p907_p8 = scmp.ne.s32.totalorder %s1273_s14, %s906_s23  ;;  %p912_p2 = scmp.lt.u32.totalorder %s1273_s14, %s1433_s3 }
  0x77   : > { %p913_p4 = scmp.lt.u32.totalorder %s911_s25, %s906_s23  ;;  %p915_p0 = scmp.lt.u32.totalorder %s906_s23, %s1273_s14 }
  0x78   : > { %p909_p5 = pnand %p907_p8, %p1204_p11 }
  0x79   : > { %p914_p12 = por %p913_p4, %p912_p2 }
  0x7a   : > { %p910_p1 = pneg %p909_p5 }
  0x7b   : > { %p916_p3 = por %p915_p0, %p914_p12 }
  0x7d   : > { %p917_p13 = pnand %p916_p3, %p910_p1 }
  0x7f   : > { %920 = shalt.err (!%p917_p13)
}
  0x80   : > { %s921_s13 = scalar_lea.vmem %s1276_s0, 512  ;;  %s1053_s20 = smov [#allocation8]  }
  0x81   : > { %p922_p7 = scmp.ne.s32.totalorder %s1276_s0, %s921_s13  ;;  %s926_s26 = sshll.u32 %s1053_s20, 4  ;;  %s927_s26 = int_to_ptr.vmem [resolvable:$false] %s926_s26 }
  0x82   : > { %s928_s15 = scalar_lea.vmem %s927_s26, 1024  ;;  %p929_p8 = scmp.lt.s32.totalorder %s1276_s0, %s927_s26 }
  0x83   : > { %p924_p9 = pnand %p922_p7, %p1204_p11  ;;  %p930_p5 = scmp.lt.s32.totalorder %s928_s15, %s921_s13 }
  0x85   : > { %p925_p10 = pneg %p924_p9  ;;  %p931_p2 = por %p930_p5, %p929_p8 }
  0x87   : > { %p932_p4 = pnand %p931_p2, %p925_p10 }
  0x89   : > { %935 = shalt.err (!%p932_p4)
}
  0x8a   : > { %739 = dma.hbm_to_vmem [thread:$0]  (!%p1455_p6), %s1273_s14, 512, %s1276_s0, %s254_s10, %s1050_s8, %s1050_s8, %s1051_s17  }
  0x8b   : > { %p1458_p11 = scmp.ne.s32.totalorder %s1450_s7, 0 }
  0x8c   : > { %s1308_s9 = sand.u32 (!%p1458_p11), 1, %s1038_s19   ;;  %p1459_p1 = scmp.ne.s32.totalorder (!%p1458_p11), %s1447_s29, 0 }
  0x8d   : > { %276 = sbr.rel (%p1458_p11) target bundleno = 855 (0x357), region = 36  ;;  %s698_s23 = sshll.u32 (!%p1458_p11), %s1308_s9, 5 }
  0x8e   : > { %s279_s2 = scalar_lea.sflag (!%p1458_p11), [#allocation3], %s1308_s9  ;;  %s1312_s12 = scalar_lea.vmem (!%p1458_p11), [#allocation2], %s698_s23 }
  0x94   : > { %1009 = dma.done.wait (%p1459_p1), %s279_s2, 512  }
  0x95   : > { %1011 = vsyncadd (%p1459_p1), %s279_s2, 4294966784  ;;  %s287_s11 = sand.u32 1, %s1107_s22   ;;  %s291_s8 = scalar_lea.vmem [#allocation5], %s698_s23 }
  0x96   : > { %s288_s7 = scalar_lea.sflag [#allocation6], %s287_s11 }
  0x97   : > { %1013 = dma.done.wait (%p1459_p1), %s288_s7, 512  }
  0x98   : > { %1015 = vsyncadd (%p1459_p1), %s288_s7, 4294966784  ;;  %p1460_p6 = scmp.eq.s32.totalorder %s1107_s22, 0 }
  0x9a   : > { %1017 = dma.done.wait (%p1460_p6), [#allocation6], 16   ;;  %p1461_p12 = pmov %p1460_p6 }
  0x9b   : > { %s301_s17 = scalar_lea.sflag [#allocation9], %s1308_s9  ;;  %s1328_s14 = scalar_lea.vmem [#allocation8], %s698_s23 }
  0x9c   : > { %1019 = vsyncadd (%p1461_p12), [#allocation6], 4294967280 }
  0x9d   : > { %1021 = dma.done.wait (%p1459_p1), %s301_s17, 512  }
  0x9e   : > { %1023 = vsyncadd (%p1459_p1), %s301_s17, 4294966784  ;;  %v351_v0 = vld [vmem:[%s291_s8] sm:$0xff]  ;;  %v353_v1 = vld [vmem:[%s291_s8 + $0x10] sm:$0xff]  ;;  %vm484_vm0 = vcmask 7168   ;;  %s703_s29 = sshll.u32 %s1107_s22, 4  ;;  %s343_s0 = scalar_lea.vmem [#allocation11], %s1308_s9 }
  0x9f   : > { %v352_v2 = vld [vmem:[%s291_s8 + $0x8] sm:$0xff]  ;;  %v412_v3 = vmul.f32 10.0, %v351_v0  ;;  %v414_v4 = vmul.f32 10.0, %v353_v1  ;;  %v354_v5 = vld [vmem:[%s291_s8 + $0x18] sm:$0xff]  ;;  %v347_v8 = vld [vmem:[%s1312_s12] sm:$0xff]  ;;  %s1361_s25 = scalar_lea.hbm %s1435_s5, %s703_s29  ;;  %s535_s16 = sshll.u32 %s343_s0, 4  ;;  %s536_s16 = int_to_ptr.vmem [resolvable:$true] %s535_s16 }
  0xa0   : > { %v413_v6 = vmul.f32 10.0, %v352_v2  ;;  %v415_v7 = vmul.f32 10.0, %v354_v5  ;;  %v702_v9 = vld [vmem:[#allocation7] ss:$0 sm:$0xff]  ;;  %v348_v12 = vld [vmem:[%s1312_s12 + $0x8] sm:$0xff]  ;;  %v349_v13 = vld [vmem:[%s1312_s12 + $0x10] sm:$0xff] }
  0xa1   : > { %416 = vmax.xlane.f32.xlu0 %v412_v3  ;;  %420 = vmax.xlane.f32.xlu1 %v414_v4  ;;  %v376_v10 = vsub.f32 %v347_v8, %v702_v9  ;;  %v377_v14 = vsub.f32 %v348_v12, %v702_v9  ;;  %v378_v15 = vsub.f32 %v349_v13, %v702_v9  ;;  %v350_v19 = vld [vmem:[%s1312_s12 + $0x18] sm:$0xff]  ;;  %s510_s28 = scalar_lea.sflag [#allocation12], %s1308_s9  ;;  %s936_s13 = scalar_lea.vmem %s536_s16, 16 }
  0xa2   : > { %v360_v17 = vadd.f32 %v348_v12, %v347_v8  ;;  %v379_v20 = vsub.f32 %v350_v19, %v702_v9  ;;  %p937_p0 = scmp.ne.s32.totalorder %s536_s16, %s936_s13  ;;  %p1462_p3 = scmp.ne.s32.totalorder %s1448_s30, 0 }
  0xa3   : > { %v380_v11 = vmul.f32 16.0, %v376_v10  ;;  %v381_v16 = vmul.f32 16.0, %v377_v14  ;;  %v382_v18 = vmul.f32 16.0, %v378_v15  ;;  %s1054_s20 = smov [#allocation11]  }
  0xa4   : > { %v361_v21 = vadd.f32 %v360_v17, %v349_v13  ;;  %v383_v22 = vmul.f32 16.0, %v379_v20  ;;  %p938_p13 = pnand %p937_p0, %p1462_p3  ;;  %s940_s26 = sshll.u32 %s1054_s20, 4  ;;  %s941_s26 = int_to_ptr.vmem [resolvable:$false] %s940_s26 }
  0xa5   : > { %418 = vmax.xlane.f32.xlu0 %v413_v6  ;;  %422 = vmax.xlane.f32.xlu1 %v415_v7  ;;  %s942_s15 = scalar_lea.vmem %s941_s26, 32  ;;  %p943_p9 = scmp.lt.s32.totalorder %s536_s16, %s941_s26 }
  0xa6   : > { %v1338_v23 = vadd.f32 %v361_v21, %v350_v19  ;;  %v356_v21 = vld [vmem:[%s1328_s14] sm:$0xff]  ;;  %p939_p7 = pneg %p938_p13  ;;  %p944_p10 = scmp.lt.s32.totalorder %s942_s15, %s936_s13 }
  0xa8   : > { %p945_p8 = por %p944_p10, %p943_p9 }
  0xa9   : > { %384 = vmax.xlane.f32.xlu0 %v380_v11  ;;  %386 = vmax.xlane.f32.xlu1 %v381_v16 }
  0xaa   : > { %p946_p5 = pnand %p945_p8, %p939_p7 }
  0xad   : > { %388 = vmax.xlane.f32.xlu0 %v382_v18  ;;  %390 = vmax.xlane.f32.xlu1 %v383_v22 }
 0x12e   : > { %v417_v24 = vpop.xlane.xlu0 %416  ;;  %v421_v25 = vpop.xlane.xlu1 %420 }
 0x12f   : > { %v424_v26 = vsub.f32 %v412_v3, %v417_v24  ;;  %v1340_v27 = vsub.f32 %v414_v4, %v421_v25 }
 0x131   : > { %v428_v28 = vmul.f32 1.442695, %v424_v26  ;;  %v432_v29 = vmul.f32 1.442695, %v1340_v27 }
 0x132   : > { %v419_v30 = vpop.xlane.xlu0 %418  ;;  %v423_v31 = vpop.xlane.xlu1 %422 }
 0x133   : > { %786 = vpow2.f32 %v428_v28  ;;  %v425_v32 = vsub.f32 %v413_v6, %v419_v30  ;;  %v1343_v33 = vsub.f32 %v415_v7, %v423_v31  ;;  %v358_v31 = vld [vmem:[%s1328_s14 + $0x10] sm:$0xff] }
 0x134   : > { %788 = vpow2.f32 %v432_v29 }
 0x135   : > { %v430_v34 = vmul.f32 1.442695, %v425_v32  ;;  %v434_v35 = vmul.f32 1.442695, %v1343_v33 }
 0x136   : > { %v385_v40 = vpop.xlane.xlu0 %384  ;;  %v387_v43 = vpop.xlane.xlu1 %386 }
 0x137   : > { %790 = vpow2.f32 %v430_v34  ;;  %v392_v41 = vsub.f32 %v380_v11, %v385_v40  ;;  %v393_v45 = vsub.f32 %v381_v16, %v387_v43 }
 0x138   : > { %792 = vpow2.f32 %v434_v35 }
 0x139   : > { %v396_v42 = vmul.f32 1.442695, %v392_v41  ;;  %v398_v47 = vmul.f32 1.442695, %v393_v45 }
 0x13a   : > { %v389_v44 = vpop.xlane.xlu0 %388  ;;  %v391_v49 = vpop.xlane.xlu1 %390 }
 0x13b   : > { %794 = vpow2.f32 %v396_v42  ;;  %v394_v46 = vsub.f32 %v382_v18, %v389_v44  ;;  %v395_v50 = vsub.f32 %v383_v22, %v391_v49 }
 0x13c   : > { %796 = vpow2.f32 %v398_v47 }
 0x13d   : > { %v787_v36 = vpop.eup %786  ;;  %v400_v48 = vmul.f32 1.442695, %v394_v46  ;;  %v402_v51 = vmul.f32 1.442695, %v395_v50 }
 0x13e   : > { %436 = vadd.xlane.f32.xlu0 %v787_v36  ;;  %v789_v37 = vpop.eup %788 }
 0x13f   : > { %798 = vpow2.f32 %v400_v48  ;;  %v363_v48 = vrot.slane %v1338_v23, 4 }
 0x140   : > { %800 = vpow2.f32 %v402_v51 }
 0x141   : > { %v791_v38 = vpop.eup %790  ;;  %v364_v49 = vadd.f32 %v363_v48, %v1338_v23 }
 0x142   : > { %438 = vadd.xlane.f32.xlu1 %v791_v38  ;;  %440 = vadd.xlane.f32.xlu0 %v789_v37  ;;  %v793_v39 = vpop.eup %792  ;;  %v359_v38 = vld [vmem:[%s1328_s14 + $0x18] sm:$0xff] }
 0x143   : > { %v365_v50 = vrot.slane %v364_v49, 2 }
 0x145   : > { %v795_v52 = vpop.eup %794  ;;  %v366_v51 = vadd.f32 %v365_v50, %v364_v49 }
 0x146   : > { %442 = vadd.xlane.f32.xlu1 %v793_v39  ;;  %404 = vadd.xlane.f32.xlu0 %v795_v52  ;;  %v797_v53 = vpop.eup %796 }
 0x149   : > { %v799_v54 = vpop.eup %798 }
 0x14a   : > { %406 = vadd.xlane.f32.xlu1 %v797_v53  ;;  %408 = vadd.xlane.f32.xlu0 %v799_v54  ;;  %v801_v55 = vpop.eup %800 }
 0x14e   : > { %410 = vadd.xlane.f32.xlu1 %v801_v55 }
 0x1cb   : > { %v437_v56 = vpop.xlane.xlu0 %436 }
 0x1cc   : > { %802 = vlog2.f32 %v437_v56 }
 0x1cf   : > { %v439_v57 = vpop.xlane.xlu1 %438  ;;  %v441_v58 = vpop.xlane.xlu0 %440 }
 0x1d0   : > { %804 = vlog2.f32 %v439_v57 }
 0x1d1   : > { %806 = vlog2.f32 %v441_v58 }
 0x1d3   : > { %v443_v59 = vpop.xlane.xlu1 %442  ;;  %v405_v12 = vpop.xlane.xlu0 %404 }
 0x1d4   : > { %808 = vlog2.f32 %v443_v59 }
 0x1d5   : > { %810 = vrcp.f32 %v405_v12 }
 0x1d6   : > { %v803_v60 = vpop.eup %802 }
 0x1d7   : > { %v445_v61 = vmul.f32 0.6931472, %v803_v60  ;;  %v407_v13 = vpop.xlane.xlu1 %406  ;;  %v409_v14 = vpop.xlane.xlu0 %408 }
 0x1d8   : > { %812 = vrcp.f32 %v407_v13 }
 0x1d9   : > { %v452_v62 = vsub.f32 %v424_v26, %v445_v61  ;;  %814 = vrcp.f32 %v409_v14 }
 0x1da   : > { %v805_v63 = vpop.eup %804 }
 0x1db   : > { %v807_v0 = vpop.eup %806  ;;  %v447_v1 = vmul.f32 0.6931472, %v805_v63  ;;  %v456_v2 = vmul.f32 %v795_v52, %v452_v62  ;;  %v411_v15 = vpop.xlane.xlu1 %410  ;;  %v367_v52 = vrot.slane %v366_v51, 1 }
 0x1dc   : > { %v449_v3 = vmul.f32 0.6931472, %v807_v0  ;;  %816 = vrcp.f32 %v411_v15 }
 0x1dd   : > { %460 = vadd.xlane.f32.xlu0 %v456_v2  ;;  %v453_v4 = vsub.f32 %v425_v32, %v447_v1 }
 0x1de   : > { %v809_v5 = vpop.eup %808  ;;  %v454_v6 = vsub.f32 %v1340_v27, %v449_v3  ;;  %v357_v27 = vld [vmem:[%s1328_s14 + $0x8] sm:$0xff] }
 0x1df   : > { %v451_v7 = vmul.f32 0.6931472, %v809_v5  ;;  %v457_v8 = vmul.f32 %v797_v53, %v453_v4  ;;  %v811_v16 = vpop.eup %810  ;;  %v368_v53 = vadd.f32 %v367_v52, %v366_v51 }
 0x1e0   : > { %v458_v9 = vmul.f32 %v799_v54, %v454_v6 }
 0x1e1   : > { %462 = vadd.xlane.f32.xlu1 %v457_v8  ;;  %v455_v10 = vsub.f32 %v1343_v33, %v451_v7  ;;  %369 = vst [vmem:[%s343_s0] sm:$0x1] %v368_v53 }
 0x1e2   : > { %464 = vadd.xlane.f32.xlu0 %v458_v9  ;;  %v813_v20 = vpop.eup %812 }
 0x1e3   : > { %v459_v11 = vmul.f32 %v801_v55, %v455_v10  ;;  %v815_v24 = vpop.eup %814 }
 0x1e5   : > { %466 = vadd.xlane.f32.xlu1 %v459_v11 }
 0x1e6   : > { %v817_v32 = vpop.eup %816 }
 0x26a   : > { %v461_v17 = vpop.xlane.xlu0 %460 }
 0x26b   : > { %v468_v18 = vsub.f32 0.0, %v461_v17 }
 0x26d   : > { %v473_v19 = vmul.f32 %v811_v16, %v468_v18 }
 0x26e   : > { %v463_v22 = vpop.xlane.xlu1 %462 }
 0x26f   : > { %v469_v25 = vsub.f32 0.0, %v463_v22  ;;  %v465_v26 = vpop.xlane.xlu0 %464  ;;  %v480_v29 = vmul.f32 %v473_v19, %v356_v21 }
 0x270   : > { %v470_v28 = vsub.f32 0.0, %v465_v26 }
 0x271   : > { %v475_v30 = vmul.f32 %v813_v20, %v469_v25  ;;  %v485_v40 = vsel %vm484_vm0, %v480_v29, 0.0 }
 0x272   : > { %v477_v33 = vmul.f32 %v815_v24, %v470_v28  ;;  %v467_v34 = vpop.xlane.xlu1 %466 }
 0x273   : > { %v481_v35 = vmul.f32 %v475_v30, %v357_v27  ;;  %v471_v36 = vsub.f32 0.0, %v467_v34 }
 0x274   : > { %v482_v37 = vmul.f32 %v477_v33, %v358_v31 }
 0x275   : > { %v479_v39 = vmul.f32 %v817_v32, %v471_v36  ;;  %v486_v41 = vsel %vm484_vm0, %v481_v35, 0.0 }
 0x276   : > { %v487_v42 = vadd.f32 %v486_v41, %v485_v40  ;;  %v488_v44 = vsel %vm484_vm0, %v482_v37, 0.0 }
 0x277   : > { %v483_v43 = vmul.f32 %v479_v39, %v359_v38 }
 0x278   : > { %v489_v45 = vadd.f32 %v488_v44, %v487_v42 }
 0x279   : > { %v490_v46 = vsel %vm484_vm0, %v483_v43, 0.0 }
 0x27a   : > { %v491_v47 = vadd.f32 %v490_v46, %v489_v45 }
 0x27c   : > { %492 = vadd.xlane.f32.xlu0 %v491_v47 }
 0x27d   : > { %949 = shalt.err (!%p946_p5)
}
 0x27e   : > { %s950_s23 = scalar_lea.hbm %s1361_s25, 16  ;;  %s954_s11 = scalar_lea.hbm %s1435_s5, 64 }
 0x27f   : > { %p951_p2 = scmp.ne.s32.totalorder %s1361_s25, %s950_s23  ;;  %p955_p1 = scmp.lt.u32.totalorder %s1361_s25, %s1435_s5 }
 0x280   : > { %p956_p6 = scmp.lt.u32.totalorder %s954_s11, %s950_s23  ;;  %p958_p0 = scmp.lt.u32.totalorder %s950_s23, %s1361_s25 }
 0x281   : > { %p952_p4 = pnand %p951_p2, %p1462_p3 }
 0x282   : > { %p957_p12 = por %p956_p6, %p955_p1 }
 0x283   : > { %p953_p11 = pneg %p952_p4 }
 0x284   : > { %p959_p13 = por %p958_p0, %p957_p12 }
 0x286   : > { %p960_p7 = pnand %p959_p13, %p953_p11 }
 0x288   : > { %963 = shalt.err (!%p960_p7)
}
 0x289   : > { %723 = dma.vmem_to_hbm [thread:$0]  (%p1462_p3), %s536_s16, 16, %s1361_s25, %s510_s28   ;;  %vm503_vm1 = vcmask 0  }
 0x28a   : > { %s337_s17 = scalar_lea.vmem [#allocation10], %s1308_s9  ;;  %s1387_s27 = scalar_lea.hbm %s1434_s4, %s703_s29 }
 0x28b   : > { %s522_s14 = sshll.u32 %s337_s17, 4  ;;  %s506_s16 = scalar_lea.sflag [#allocation4], %s1308_s9  ;;  %s1389_s14 = int_to_ptr.vmem [resolvable:$true] %s522_s14 }
 0x28c   : > { %s964_s28 = scalar_lea.vmem %s1389_s14, 16  ;;  %s1055_s22 = smov [#allocation10]  }
 0x28d   : > { %p965_p9 = scmp.ne.s32.totalorder %s1389_s14, %s964_s28  ;;  %s968_s13 = sshll.u32 %s1055_s22, 4  ;;  %s969_s13 = int_to_ptr.vmem [resolvable:$false] %s968_s13 }
 0x28e   : > { %s970_s20 = scalar_lea.vmem %s969_s13, 32  ;;  %p971_p5 = scmp.lt.s32.totalorder %s1389_s14, %s969_s13 }
 0x28f   : > { %p966_p10 = pnand %p965_p9, %p1462_p3  ;;  %p972_p2 = scmp.lt.s32.totalorder %s970_s20, %s964_s28 }
 0x291   : > { %p967_p8 = pneg %p966_p10  ;;  %p973_p4 = por %p972_p2, %p971_p5 }
 0x293   : > { %p974_p11 = pnand %p973_p4, %p967_p8 }
 0x309   : > { %v493_v23 = vpop.xlane.xlu0 %492 }
 0x30a   : > { %v494_v54 = vrot.slane %v493_v23, 4 }
 0x30c   : > { %v495_v55 = vadd.f32 %v494_v54, %v493_v23 }
 0x30e   : > { %v496_v56 = vrot.slane %v495_v55, 2 }
 0x310   : > { %v497_v57 = vadd.f32 %v496_v56, %v495_v55 }
 0x312   : > { %v498_v58 = vrot.slane %v497_v57, 1 }
 0x314   : > { %v499_v59 = vadd.f32 %v498_v58, %v497_v57 }
 0x316   : > { %710 = vpush %v499_v59 }
 0x347   : > { %s711_s25 = spop %710 }
 0x348   : > { %v501_v60 = vstv %s711_s25 }
 0x349   : > { %504 = vst.msk [vmem:[%s337_s17] sm:$0x1] %vm503_vm1, %v501_v60 }
 0x34a   : > { %977 = shalt.err (!%p974_p11)
}
 0x34b   : > { %s978_s9 = scalar_lea.hbm %s1387_s27, 16  ;;  %s982_s15 = scalar_lea.hbm %s1434_s4, 64 }
 0x34c   : > { %p979_p1 = scmp.ne.s32.totalorder %s1387_s27, %s978_s9  ;;  %p983_p0 = scmp.lt.u32.totalorder %s1387_s27, %s1434_s4 }
 0x34d   : > { %p984_p13 = scmp.lt.u32.totalorder %s982_s15, %s978_s9  ;;  %p986_p9 = scmp.lt.u32.totalorder %s978_s9, %s1387_s27 }
 0x34e   : > { %p980_p6 = pnand %p979_p1, %p1462_p3 }
 0x34f   : > { %p985_p7 = por %p984_p13, %p983_p0 }
 0x350   : > { %p981_p12 = pneg %p980_p6 }
 0x351   : > { %p987_p10 = por %p986_p9, %p985_p7 }
 0x353   : > { %p988_p8 = pnand %p987_p10, %p981_p12 }
 0x355   : > { %991 = shalt.err (!%p988_p8)
}
 0x356   : > { %722 = dma.vmem_to_hbm [thread:$0]  (%p1462_p3), %s1389_s14, 16, %s1387_s27, %s506_s16  }
 0x357 PF: > { %p750_p5 = scmp.ge.s32.totalorder %s1046_s21, 2  ;;  %s547_s12 = sand.u32 1, %s1034_s18  }
 0x358   : > { %p1463_p2 = scmp.ne.s32.totalorder %s1449_s6, 0  ;;  %s548_s11 = scalar_lea.sflag [#allocation4], %s547_s12 }
 0x35a   : > { %p741_p4 = pnand %p750_p5, %p1463_p2 }
 0x35c   : > { %1025 = dma.done.wait (!%p741_p4), %s548_s11, 16  }
 0x35d   : > { %1027 = vsyncadd (!%p741_p4), %s548_s11, 4294967280  ;;  %s556_s7 = scalar_lea.sflag [#allocation12], %s547_s12 }
 0x35e   : > { %1029 = dma.done.wait (!%p741_p4), %s556_s7, 16  }
 0x35f   : > { %1031 = vsyncadd (!%p741_p4), %s556_s7, 4294967280  ;;  %s1464_s30 = sld [smem:[#allocation19_spill]]  ;;  %s1465_s20 = sld [smem:[#allocation20_spill]] }
 0x360   : > { %p28_p3 = scmp.ge.s32.totalorder %s1111_s24, 6   ;;  %s1466_s18 = smov %s1038_s19 }
 0x361   : > { %s1468_s21 = smov %s1111_s24 }
 0x362   :  { %30 = sbr.rel (!%p28_p3) target bundleno = 14 (0xe), region = 128 }
 0x365   : > { %s1467_s19 = smov %s1464_s30 }
 0x369   :  { %560 = vsyncpa [#allocation3], 1 }
 0x36a   :  { %562 = vsyncpa [#allocation3 + $0x1], 1 }
 0x36b   :  { %563 = vsyncpa [#allocation6], 1 }
 0x36c   :  { %565 = vsyncpa [#allocation6 + $0x1], 1 }
 0x36d   :  { %566 = vsyncpa [#allocation9], 1 }
 0x36e   :  { %568 = vsyncpa [#allocation9 + $0x1], 1 }
 0x36f   :  { %569 = vsyncpa [#allocation4], 1 }
 0x370   :  { %571 = vsyncpa [#allocation4 + $0x1], 1 }
 0x371   :  { %572 = vsyncpa [#allocation12], 1 }
 0x372   :  { %574 = vsyncpa [#allocation12 + $0x1], 1 }

</bundles_post_ra>
